<compile_context>
chip_gen: v6e
topology: v6e:2x2x1
jax: 0.10.0
libtpu: 0.0.40
codegen_flags: <defaults>
</compile_context>

<pallas_src>
import functools
import math

import jax
import jax.numpy as jnp
from jax.experimental import pallas as pl
from jax.experimental.pallas import tpu as pltpu

_VMEM_LIMIT = 64 * 1024 * 1024
_NEG_INF = -1e30


# ----------------------------------------------------------------------------
# Shared math helpers (used both inside kernels and by the pure-JAX reference)
# ----------------------------------------------------------------------------
def _layer_norm(x, gamma, beta, eps=1e-5):
    """nn.LayerNorm over the last axis (biased variance, eps=1e-5)."""
    mean = jnp.mean(x, axis=-1, keepdims=True)
    xc = x - mean
    var = jnp.mean(xc * xc, axis=-1, keepdims=True)
    return xc * jax.lax.rsqrt(var + eps) * gamma + beta


# ----------------------------------------------------------------------------
# Kernels
# ----------------------------------------------------------------------------
def _attention_block(xq, xkv, wq_ref, bq_ref, wk_ref, bk_ref, wv_ref, bv_ref,
                     wo_ref, bo_ref, sel, n_heads, causal):
    """Multi-head attention for one batch row.

    xq: (Lq, D), xkv: (Lk, D).  Weight refs hold the self (sel=0) and cross
    (sel=1) projections stacked per head along the leading axis:
      wq/wk/wv: (2H, D, dh), bq/bk/bv: (2H, 1, dh)
      wo:       (2H, dh, D)  (per-head row blocks of the out projection)
      bo:       (2, 1, D)
    """
    lq, d_model = xq.shape
    lk = xkv.shape[0]
    dh = wq_ref.shape[-1]
    scale = 1.0 / math.sqrt(dh)
    base = sel * n_heads

    if causal:
        row = jax.lax.broadcasted_iota(jnp.int32, (lq, lk), 0)
        col = jax.lax.broadcasted_iota(jnp.int32, (lq, lk), 1)
        keep = col <= row

    out = jnp.zeros((lq, d_model), jnp.float32)
    for h in range(n_heads):                                   # static, small
        i = base + h
        q = jnp.dot(xq, wq_ref[i], preferred_element_type=jnp.float32) + bq_ref[i]
        k = jnp.dot(xkv, wk_ref[i], preferred_element_type=jnp.float32) + bk_ref[i]
        v = jnp.dot(xkv, wv_ref[i], preferred_element_type=jnp.float32) + bv_ref[i]
        s = jnp.dot(q, k.T, preferred_element_type=jnp.float32) * scale
        if causal:
            s = jnp.where(keep, s, _NEG_INF)
        s = s - jnp.max(s, axis=-1, keepdims=True)             # stable softmax
        p = jnp.exp(s)
        p = p / jnp.sum(p, axis=-1, keepdims=True)
        ov = jnp.dot(p, v, preferred_element_type=jnp.float32)           # (Lq, dh)
        out = out + jnp.dot(ov, wo_ref[i], preferred_element_type=jnp.float32)
    return out + bo_ref[sel]


def _decoder_layer_kernel(n_heads,
                          x_ref, c_ref,
                          wq_ref, bq_ref, wk_ref, bk_ref, wv_ref, bv_ref,
                          wo_ref, bo_ref, lng_ref, lnb_ref,
                          w1_ref, bf1_ref, w2_ref, bf2_ref,
                          o_ref):
    """One fused Informer DecoderLayer for one batch row."""
    x = x_ref[0].astype(jnp.float32)                           # (Lq, D)
    c = c_ref[0].astype(jnp.float32)                           # (Lk, D)

    # 1) masked self-attention + residual + LayerNorm1
    a = _attention_block(x, x, wq_ref, bq_ref, wk_ref, bk_ref, wv_ref, bv_ref,
                         wo_ref, bo_ref, sel=0, n_heads=n_heads, causal=True)
    x = _layer_norm(x + a, lng_ref[0], lnb_ref[0])

    # 2) cross-attention over the encoder output + residual + LayerNorm2
    a = _attention_block(x, c, wq_ref, bq_ref, wk_ref, bk_ref, wv_ref, bv_ref,
                         wo_ref, bo_ref, sel=1, n_heads=n_heads, causal=False)
    x = _layer_norm(x + a, lng_ref[1], lnb_ref[1])

    # 3) position-wise FFN (Conv1d kernel_size=1 == dense) + residual + LN3
    y = jnp.dot(x, w1_ref[...], preferred_element_type=jnp.float32) + bf1_ref[...]
    y = jnp.maximum(y, 0.0)                                    # activation="relu"
    y = jnp.dot(y, w2_ref[...], preferred_element_type=jnp.float32) + bf2_ref[...]
    x = _layer_norm(x + y, lng_ref[2], lnb_ref[2])

    o_ref[0] = x.astype(o_ref.dtype)


def _final_norm_kernel(x_ref, g_ref, b_ref, o_ref):
    """Decoder's optional final nn.LayerNorm(d_model)."""
    o_ref[0] = _layer_norm(x_ref[0].astype(jnp.float32),
                           g_ref[...], b_ref[...]).astype(o_ref.dtype)


# ----------------------------------------------------------------------------
# Host-side wrappers (the Decoder.forward orchestration)
# ----------------------------------------------------------------------------
def _const_spec(shape):
    """BlockSpec for a weight that stays resident across all grid steps."""
    return pl.BlockSpec(shape, lambda *_: (0,) * len(shape))


def decoder_layer(x, cross, p, *, n_heads):
    """One Informer DecoderLayer: x (B, Lq, D), cross (B, Lk, D) -> (B, Lq, D)."""
    B, Lq, D = x.shape
    _, Lk, _ = cross.shape
    H = n_heads
    dh = D // H
    assert D == H * dh, "d_model must be divisible by n_heads"
    F = p['w1'].shape[-1]

    in_specs = [
        pl.BlockSpec((1, Lq, D), lambda b: (b, 0, 0)),         # x tile
        pl.BlockSpec((1, Lk, D), lambda b: (b, 0, 0)),         # cross tile
        _const_spec((2 * H, D, dh)),                           # wq
        _const_spec((2 * H, 1, dh)),                           # bq
        _const_spec((2 * H, D, dh)),                           # wk
        _const_spec((2 * H, 1, dh)),                           # bk
        _const_spec((2 * H, D, dh)),                           # wv
        _const_spec((2 * H, 1, dh)),                           # bv
        _const_spec((2 * H, dh, D)),                           # wo (per-head rows)
        _const_spec((2, 1, D)),                                # bo
        _const_spec((3, 1, D)),                                # LayerNorm gammas
        _const_spec((3, 1, D)),                                # LayerNorm betas
        _const_spec((D, F)),                                   # conv1 weight
        _const_spec((1, F)),                                   # conv1 bias
        _const_spec((F, D)),                                   # conv2 weight
        _const_spec((1, D)),                                   # conv2 bias
    ]
    return pl.pallas_call(
        functools.partial(_decoder_layer_kernel, H),
        grid=(B,),
        in_specs=in_specs,
        out_specs=pl.BlockSpec((1, Lq, D), lambda b: (b, 0, 0)),
        out_shape=jax.ShapeDtypeStruct((B, Lq, D), x.dtype),
        compiler_params=pltpu.CompilerParams(
            dimension_semantics=("parallel",),
            vmem_limit_bytes=_VMEM_LIMIT),
    )(x, cross, p['wq'], p['bq'], p['wk'], p['bk'], p['wv'], p['bv'],
      p['wo'], p['bo'], p['ln_g'], p['ln_b'], p['w1'], p['b1'], p['w2'], p['b2'])


def final_layer_norm(x, gamma, beta):
    """Decoder's final LayerNorm.  gamma/beta: (1, D)."""
    B, L, D = x.shape
    return pl.pallas_call(
        _final_norm_kernel,
        grid=(B,),
        in_specs=[pl.BlockSpec((1, L, D), lambda b: (b, 0, 0)),
                  _const_spec((1, D)), _const_spec((1, D))],
        out_specs=pl.BlockSpec((1, L, D), lambda b: (b, 0, 0)),
        out_shape=jax.ShapeDtypeStruct((B, L, D), x.dtype),
        compiler_params=pltpu.CompilerParams(
            dimension_semantics=("parallel",),
            vmem_limit_bytes=_VMEM_LIMIT),
    )(x, gamma, beta)


def decoder_forward(x, cross, layer_params, norm_params=None, *, n_heads):
    """Decoder.forward: loop over DecoderLayers, then optional LayerNorm."""
    for p in layer_params:
        x = decoder_layer(x, cross, p, n_heads=n_heads)
    if norm_params is not None:
        x = final_layer_norm(x, norm_params['gamma'], norm_params['beta'])
    return x


# ----------------------------------------------------------------------------
# Pure-JAX reference (mirrors PyTorch semantics, high-precision matmuls)
# ----------------------------------------------------------------------------
def _attention_ref(xq, xkv, wq, bq, wk, bk, wv, bv, wo, bo, sel, H, causal):
    HI = jax.lax.Precision.HIGHEST
    B, Lq, D = xq.shape
    Lk = xkv.shape[1]
    dh = wq.shape[-1]
    sl = slice(sel * H, (sel + 1) * H)
    q = jnp.einsum('bld,hde->blhe', xq, wq[sl], precision=HI) + bq[sl].reshape(1, 1, H, dh)
    k = jnp.einsum('bsd,hde->bshe', xkv, wk[sl], precision=HI) + bk[sl].reshape(1, 1, H, dh)
    v = jnp.einsum('bsd,hde->bshe', xkv, wv[sl], precision=HI) + bv[sl].reshape(1, 1, H, dh)
    s = jnp.einsum('blhe,bshe->bhls', q, k, precision=HI) / math.sqrt(dh)
    if causal:
        keep = jnp.tril(jnp.ones((Lq, Lk), bool))
        s = jnp.where(keep[None, None], s, -jnp.inf)
    p = jax.nn.softmax(s, axis=-1)
    o = jnp.einsum('bhls,bshe->blhe', p, v, precision=HI)
    o = jnp.einsum('blhe,hed->bld', o, wo[sl], precision=HI)
    return o + bo[sel].reshape(1, 1, D)


def decoder_ref(x, cross, layer_params, norm_params, *, n_heads):
    HI = jax.lax.Precision.HIGHEST
    for p in layer_params:
        a = _attention_ref(x, x, p['wq'], p['bq'], p['wk'], p['bk'], p['wv'],
                           p['bv'], p['wo'], p['bo'], 0, n_heads, True)
        x = _layer_norm(x + a, p['ln_g'][0], p['ln_b'][0])
        a = _attention_ref(x, cross, p['wq'], p['bq'], p['wk'], p['bk'], p['wv'],
                           p['bv'], p['wo'], p['bo'], 1, n_heads, False)
        x = _layer_norm(x + a, p['ln_g'][1], p['ln_b'][1])
        y = jnp.maximum(jnp.einsum('bld,df->blf', x, p['w1'], precision=HI) + p['b1'], 0.0)
        y = jnp.einsum('blf,fd->bld', y, p['w2'], precision=HI) + p['b2']
        x = _layer_norm(x + y, p['ln_g'][2], p['ln_b'][2])
    if norm_params is not None:
        x = _layer_norm(x, norm_params['gamma'], norm_params['beta'])
    return x


# ----------------------------------------------------------------------------
# Parameter construction (kernel-friendly layouts; equivalent to the PyTorch
# Linear/Conv1d(k=1)/LayerNorm parameters of AttentionLayer + DecoderLayer).
# ----------------------------------------------------------------------------
def init_decoder_params(key, n_layers, d_model, d_ff, n_heads):
    dh = d_model // n_heads
    sd = 1.0 / math.sqrt(d_model)
    sf = 1.0 / math.sqrt(d_ff)
    layers = []
    for _ in range(n_layers):
        key, *ks = jax.random.split(key, 17)
        layers.append(dict(
            wq=jax.random.normal(ks[0], (2 * n_heads, d_model, dh), jnp.float32) * sd,
            bq=jax.random.normal(ks[1], (2 * n_heads, 1, dh), jnp.float32) * 0.02,
            wk=jax.random.normal(ks[2], (2 * n_heads, d_model, dh), jnp.float32) * sd,
            bk=jax.random.normal(ks[3], (2 * n_heads, 1, dh), jnp.float32) * 0.02,
            wv=jax.random.normal(ks[4], (2 * n_heads, d_model, dh), jnp.float32) * sd,
            bv=jax.random.normal(ks[5], (2 * n_heads, 1, dh), jnp.float32) * 0.02,
            wo=jax.random.normal(ks[6], (2 * n_heads, dh, d_model), jnp.float32) * sd,
            bo=jax.random.normal(ks[7], (2, 1, d_model), jnp.float32) * 0.02,
            ln_g=jnp.ones((3, 1, d_model), jnp.float32),       # LayerNorm weight init
            ln_b=jnp.zeros((3, 1, d_model), jnp.float32),      # LayerNorm bias init
            w1=jax.random.normal(ks[8], (d_model, d_ff), jnp.float32) * sd,
            b1=jax.random.normal(ks[9], (1, d_ff), jnp.float32) * 0.02,
            w2=jax.random.normal(ks[10], (d_ff, d_model), jnp.float32) * sf,
            b2=jax.random.normal(ks[11], (1, d_model), jnp.float32) * 0.02,
        ))
    norm = dict(gamma=jnp.ones((1, d_model), jnp.float32),
                beta=jnp.zeros((1, d_model), jnp.float32))
    return layers, norm, key


def _run_case(key, *, B, Lq, Lk, D, H, F, n_layers, use_norm, tol=5e-2):
    kx, kc, kp = jax.random.split(key, 3)
    x = jax.random.normal(kx, (B, Lq, D), jnp.float32)
    cross = jax.random.normal(kc, (B, Lk, D), jnp.float32)
    layer_params, norm_params, _ = init_decoder_params(kp, n_layers, D, F, H)
    norm_params = norm_params if use_norm else None

    run = jax.jit(functools.partial(decoder_forward, n_heads=H))
    out = jax.block_until_ready(run(x, cross, layer_params, norm_params))
    assert out.shape == (B, Lq, D), out.shape

    ref = decoder_ref(x, cross, layer_params, norm_params, n_heads=H)
    err = float(jnp.max(jnp.abs(out - ref)))
    assert err < tol, f"kernel vs reference mismatch: max abs err = {err}"


if __name__ == "__main__":
    k1, k2 = jax.random.split(jax.random.PRNGKey(0))
    # Canonical small Informer decoder: 2 layers + final LayerNorm.
    _run_case(k1, B=2, Lq=8, Lk=16, D=32, H=4, F=64, n_layers=2, use_norm=True)
    # Single layer, different head count, no final norm (Decoder.norm is None).
    _run_case(k2, B=3, Lq=8, Lk=12, D=16, H=2, F=48, n_layers=1, use_norm=False)
    print("KERNEL_OK")
</pallas_src>

<mosaic_0001>
module attributes {stable_mosaic.version = 11 : i64} {
  func.func @_final_norm_kernel(%arg0: i32, %arg1: memref<1x8x32xf32, #tpu.memory_space<vmem>>, %arg2: memref<1x32xf32, #tpu.memory_space<vmem>>, %arg3: memref<1x32xf32, #tpu.memory_space<vmem>>, %arg4: memref<1x8x32xf32, #tpu.memory_space<vmem>>) attributes {dimension_semantics = [#tpu.dimension_semantics<parallel>], iteration_bounds = array<i64: 2>, scalar_prefetch = 0 : i64, scratch_operands = 0 : i64, tpu.core_type = #tpu.core_type<tc>, window_params = [{transform_indices = @transform_0, window_bounds = array<i64: 1, 8, 32>}, {pipeline_mode = #tpu.pipeline_mode<synchronous>, transform_indices = @transform_1, window_bounds = array<i64: 1, 32>}, {pipeline_mode = #tpu.pipeline_mode<synchronous>, transform_indices = @transform_2, window_bounds = array<i64: 1, 32>}, {transform_indices = @transform_3, window_bounds = array<i64: 1, 8, 32>}]} {
    %c0 = arith.constant 0 : index
    %c0_0 = arith.constant 0 : index
    %c0_1 = arith.constant 0 : index
    %0 = vector.load %arg1[%c0, %c0_0, %c0_1] : memref<1x8x32xf32, #tpu.memory_space<vmem>>, vector<1x8x32xf32>
    %1 = vector.shape_cast %0 : vector<1x8x32xf32> to vector<8x32xf32>
    %c0_2 = arith.constant 0 : index
    %c0_3 = arith.constant 0 : index
    %2 = vector.load %arg2[%c0_2, %c0_3] : memref<1x32xf32, #tpu.memory_space<vmem>>, vector<1x32xf32>
    %c0_4 = arith.constant 0 : index
    %c0_5 = arith.constant 0 : index
    %3 = vector.load %arg3[%c0_4, %c0_5] : memref<1x32xf32, #tpu.memory_space<vmem>>, vector<1x32xf32>
    %cst = arith.constant dense<0.000000e+00> : vector<8xf32>
    %4 = vector.multi_reduction <add>, %1, %cst [1] : vector<8x32xf32> to vector<8xf32>
    %5 = vector.shape_cast %4 : vector<8xf32> to vector<8x1xf32>
    %cst_6 = arith.constant 3.200000e+01 : f32
    %6 = vector.broadcast %cst_6 : f32 to vector<8x1xf32>
    %7 = arith.divf %5, %6 : vector<8x1xf32>
    %8 = vector.broadcast %7 : vector<8x1xf32> to vector<8x32xf32>
    %9 = arith.subf %1, %8 : vector<8x32xf32>
    %10 = arith.mulf %9, %9 : vector<8x32xf32>
    %cst_7 = arith.constant dense<0.000000e+00> : vector<8xf32>
    %11 = vector.multi_reduction <add>, %10, %cst_7 [1] : vector<8x32xf32> to vector<8xf32>
    %12 = vector.shape_cast %11 : vector<8xf32> to vector<8x1xf32>
    %cst_8 = arith.constant 3.200000e+01 : f32
    %13 = vector.broadcast %cst_8 : f32 to vector<8x1xf32>
    %14 = arith.divf %12, %13 : vector<8x1xf32>
    %cst_9 = arith.constant 9.99999974E-6 : f32
    %15 = vector.broadcast %cst_9 : f32 to vector<8x1xf32>
    %16 = arith.addf %14, %15 : vector<8x1xf32>
    %17 = math.rsqrt %16 : vector<8x1xf32>
    %18 = vector.broadcast %17 : vector<8x1xf32> to vector<8x32xf32>
    %19 = arith.mulf %9, %18 : vector<8x32xf32>
    %20 = vector.broadcast %2 : vector<1x32xf32> to vector<8x32xf32>
    %21 = arith.mulf %19, %20 : vector<8x32xf32>
    %22 = vector.broadcast %3 : vector<1x32xf32> to vector<8x32xf32>
    %23 = arith.addf %21, %22 : vector<8x32xf32>
    %c0_10 = arith.constant 0 : index
    %c0_11 = arith.constant 0 : index
    %c0_12 = arith.constant 0 : index
    %24 = vector.load %arg4[%c0_10, %c0_11, %c0_12] : memref<1x8x32xf32, #tpu.memory_space<vmem>>, vector<1x8x32xf32>
    %25 = vector.shape_cast %24 : vector<1x8x32xf32> to vector<8x32xf32>
    %26 = vector.shape_cast %23 : vector<8x32xf32> to vector<1x8x32xf32>
    tpu.vector_store %arg4[%c0_10, %c0_11, %c0_12], %26 {strides = array<i32>} : memref<1x8x32xf32, #tpu.memory_space<vmem>>, vector<1x8x32xf32>,
    return
  }
  func.func @transform_0(%arg0: i32) -> (i32, i32, i32) {
    %c0_i32 = arith.constant 0 : i32
    %c0_i32_0 = arith.constant 0 : i32
    %c0_i32_1 = arith.constant 0 : i32
    return %arg0, %c0_i32, %c0_i32_0 : i32, i32, i32
  }
  func.func @transform_1(%arg0: i32) -> (i32, i32) {
    %c0_i32 = arith.constant 0 : i32
    %c0_i32_0 = arith.constant 0 : i32
    %c0_i32_1 = arith.constant 0 : i32
    return %c0_i32, %c0_i32_0 : i32, i32
  }
  func.func @transform_2(%arg0: i32) -> (i32, i32) {
    %c0_i32 = arith.constant 0 : i32
    %c0_i32_0 = arith.constant 0 : i32
    %c0_i32_1 = arith.constant 0 : i32
    return %c0_i32, %c0_i32_0 : i32, i32
  }
  func.func @transform_3(%arg0: i32) -> (i32, i32, i32) {
    %c0_i32 = arith.constant 0 : i32
    %c0_i32_0 = arith.constant 0 : i32
    %c0_i32_1 = arith.constant 0 : i32
    return %arg0, %c0_i32, %c0_i32_0 : i32, i32, i32
  }
}

module attributes {stable_mosaic.version = 11 : i64} {
  func.func @_decoder_layer_kernel(%arg0: i32, %arg1: memref<1x8x32xf32, #tpu.memory_space<vmem>>, %arg2: memref<1x16x32xf32, #tpu.memory_space<vmem>>, %arg3: memref<8x32x8xf32, #tpu.memory_space<vmem>>, %arg4: memref<8x1x8xf32, #tpu.memory_space<vmem>>, %arg5: memref<8x32x8xf32, #tpu.memory_space<vmem>>, %arg6: memref<8x1x8xf32, #tpu.memory_space<vmem>>, %arg7: memref<8x32x8xf32, #tpu.memory_space<vmem>>, %arg8: memref<8x1x8xf32, #tpu.memory_space<vmem>>, %arg9: memref<8x8x32xf32, #tpu.memory_space<vmem>>, %arg10: memref<2x1x32xf32, #tpu.memory_space<vmem>>, %arg11: memref<3x1x32xf32, #tpu.memory_space<vmem>>, %arg12: memref<3x1x32xf32, #tpu.memory_space<vmem>>, %arg13: memref<32x64xf32, #tpu.memory_space<vmem>>, %arg14: memref<1x64xf32, #tpu.memory_space<vmem>>, %arg15: memref<64x32xf32, #tpu.memory_space<vmem>>, %arg16: memref<1x32xf32, #tpu.memory_space<vmem>>, %arg17: memref<1x8x32xf32, #tpu.memory_space<vmem>>) attributes {dimension_semantics = [#tpu.dimension_semantics<parallel>], iteration_bounds = array<i64: 2>, scalar_prefetch = 0 : i64, scratch_operands = 0 : i64, tpu.core_type = #tpu.core_type<tc>, window_params = [{transform_indices = @transform_0, window_bounds = array<i64: 1, 8, 32>}, {transform_indices = @transform_1, window_bounds = array<i64: 1, 16, 32>}, {pipeline_mode = #tpu.pipeline_mode<synchronous>, transform_indices = @transform_2, window_bounds = array<i64: 8, 32, 8>}, {pipeline_mode = #tpu.pipeline_mode<synchronous>, transform_indices = @transform_3, window_bounds = array<i64: 8, 1, 8>}, {pipeline_mode = #tpu.pipeline_mode<synchronous>, transform_indices = @transform_4, window_bounds = array<i64: 8, 32, 8>}, {pipeline_mode = #tpu.pipeline_mode<synchronous>, transform_indices = @transform_5, window_bounds = array<i64: 8, 1, 8>}, {pipeline_mode = #tpu.pipeline_mode<synchronous>, transform_indices = @transform_6, window_bounds = array<i64: 8, 32, 8>}, {pipeline_mode = #tpu.pipeline_mode<synchronous>, transform_indices = @transform_7, window_bounds = array<i64: 8, 1, 8>}, {pipeline_mode = #tpu.pipeline_mode<synchronous>, transform_indices = @transform_8, window_bounds = array<i64: 8, 8, 32>}, {pipeline_mode = #tpu.pipeline_mode<synchronous>, transform_indices = @transform_9, window_bounds = array<i64: 2, 1, 32>}, {pipeline_mode = #tpu.pipeline_mode<synchronous>, transform_indices = @transform_10, window_bounds = array<i64: 3, 1, 32>}, {pipeline_mode = #tpu.pipeline_mode<synchronous>, transform_indices = @transform_11, window_bounds = array<i64: 3, 1, 32>}, {pipeline_mode = #tpu.pipeline_mode<synchronous>, transform_indices = @transform_12, window_bounds = array<i64: 32, 64>}, {pipeline_mode = #tpu.pipeline_mode<synchronous>, transform_indices = @transform_13, window_bounds = array<i64: 1, 64>}, {pipeline_mode = #tpu.pipeline_mode<synchronous>, transform_indices = @transform_14, window_bounds = array<i64: 64, 32>}, {pipeline_mode = #tpu.pipeline_mode<synchronous>, transform_indices = @transform_15, window_bounds = array<i64: 1, 32>}, {transform_indices = @transform_16, window_bounds = array<i64: 1, 8, 32>}]} {
    %c0 = arith.constant 0 : index
    %c0_0 = arith.constant 0 : index
    %c0_1 = arith.constant 0 : index
    %0 = vector.load %arg1[%c0, %c0_0, %c0_1] : memref<1x8x32xf32, #tpu.memory_space<vmem>>, vector<1x8x32xf32>
    %1 = vector.shape_cast %0 : vector<1x8x32xf32> to vector<8x32xf32>
    %c0_2 = arith.constant 0 : index
    %c0_3 = arith.constant 0 : index
    %c0_4 = arith.constant 0 : index
    %2 = vector.load %arg2[%c0_2, %c0_3, %c0_4] : memref<1x16x32xf32, #tpu.memory_space<vmem>>, vector<1x16x32xf32>
    %3 = vector.shape_cast %2 : vector<1x16x32xf32> to vector<16x32xf32>
    %4 = tpu.iota {dimensions = array<i32: 0>} : vector<8x8xi32>
    %5 = tpu.iota {dimensions = array<i32: 1>} : vector<8x8xi32>
    %6 = arith.cmpi sle, %5, %4 : vector<8x8xi32>
    %cst = arith.constant 0.000000e+00 : f32
    %7 = vector.broadcast %cst : f32 to vector<8x32xf32>
    %c0_5 = arith.constant 0 : index
    %c0_6 = arith.constant 0 : index
    %c0_7 = arith.constant 0 : index
    %8 = vector.load %arg3[%c0_5, %c0_6, %c0_7] : memref<8x32x8xf32, #tpu.memory_space<vmem>>, vector<1x32x8xf32>
    %9 = vector.shape_cast %8 : vector<1x32x8xf32> to vector<32x8xf32>
    %cst_8 = arith.constant dense<0.000000e+00> : vector<8x8xf32>
    %10 = tpu.matmul %1, %9, %cst_8 {dimension_numbers = #tpu.dot_dimension_numbers<[1], [0], [0], [1], [0, 0, 1, 1], [], []>} : vector<8x32xf32>, vector<32x8xf32>, vector<8x8xf32> -> vector<8x8xf32>
    %c0_9 = arith.constant 0 : index
    %c0_10 = arith.constant 0 : index
    %c0_11 = arith.constant 0 : index
    %11 = vector.load %arg4[%c0_9, %c0_10, %c0_11] : memref<8x1x8xf32, #tpu.memory_space<vmem>>, vector<1x1x8xf32>
    %12 = vector.shape_cast %11 : vector<1x1x8xf32> to vector<1x8xf32>
    %13 = vector.broadcast %12 : vector<1x8xf32> to vector<8x8xf32>
    %14 = arith.addf %10, %13 : vector<8x8xf32>
    %c0_12 = arith.constant 0 : index
    %c0_13 = arith.constant 0 : index
    %c0_14 = arith.constant 0 : index
    %15 = vector.load %arg5[%c0_12, %c0_13, %c0_14] : memref<8x32x8xf32, #tpu.memory_space<vmem>>, vector<1x32x8xf32>
    %16 = vector.shape_cast %15 : vector<1x32x8xf32> to vector<32x8xf32>
    %cst_15 = arith.constant dense<0.000000e+00> : vector<8x8xf32>
    %17 = tpu.matmul %1, %16, %cst_15 {dimension_numbers = #tpu.dot_dimension_numbers<[1], [0], [0], [1], [0, 0, 1, 1], [], []>} : vector<8x32xf32>, vector<32x8xf32>, vector<8x8xf32> -> vector<8x8xf32>
    %c0_16 = arith.constant 0 : index
    %c0_17 = arith.constant 0 : index
    %c0_18 = arith.constant 0 : index
    %18 = vector.load %arg6[%c0_16, %c0_17, %c0_18] : memref<8x1x8xf32, #tpu.memory_space<vmem>>, vector<1x1x8xf32>
    %19 = vector.shape_cast %18 : vector<1x1x8xf32> to vector<1x8xf32>
    %20 = vector.broadcast %19 : vector<1x8xf32> to vector<8x8xf32>
    %21 = arith.addf %17, %20 : vector<8x8xf32>
    %c0_19 = arith.constant 0 : index
    %c0_20 = arith.constant 0 : index
    %c0_21 = arith.constant 0 : index
    %22 = vector.load %arg7[%c0_19, %c0_20, %c0_21] : memref<8x32x8xf32, #tpu.memory_space<vmem>>, vector<1x32x8xf32>
    %23 = vector.shape_cast %22 : vector<1x32x8xf32> to vector<32x8xf32>
    %cst_22 = arith.constant dense<0.000000e+00> : vector<8x8xf32>
    %24 = tpu.matmul %1, %23, %cst_22 {dimension_numbers = #tpu.dot_dimension_numbers<[1], [0], [0], [1], [0, 0, 1, 1], [], []>} : vector<8x32xf32>, vector<32x8xf32>, vector<8x8xf32> -> vector<8x8xf32>
    %c0_23 = arith.constant 0 : index
    %c0_24 = arith.constant 0 : index
    %c0_25 = arith.constant 0 : index
    %25 = vector.load %arg8[%c0_23, %c0_24, %c0_25] : memref<8x1x8xf32, #tpu.memory_space<vmem>>, vector<1x1x8xf32>
    %26 = vector.shape_cast %25 : vector<1x1x8xf32> to vector<1x8xf32>
    %27 = vector.broadcast %26 : vector<1x8xf32> to vector<8x8xf32>
    %28 = arith.addf %24, %27 : vector<8x8xf32>
    %29 = tpu.transpose %21, [1, 0] : vector<8x8xf32> -> vector<8x8xf32>
    %cst_26 = arith.constant dense<0.000000e+00> : vector<8x8xf32>
    %30 = tpu.matmul %14, %29, %cst_26 {dimension_numbers = #tpu.dot_dimension_numbers<[1], [0], [0], [1], [0, 0, 1, 1], [], []>} : vector<8x8xf32>, vector<8x8xf32>, vector<8x8xf32> -> vector<8x8xf32>
    %cst_27 = arith.constant 0.353553385 : f32
    %31 = vector.broadcast %cst_27 : f32 to vector<8x8xf32>
    %32 = arith.mulf %30, %31 : vector<8x8xf32>
    %cst_28 = arith.constant -1.000000e+30 : f32
    %33 = vector.broadcast %cst_28 : f32 to vector<8x8xf32>
    %34 = arith.select %6, %32, %33 : vector<8x8xi1>, vector<8x8xf32>
    %cst_29 = arith.constant dense<0xFF800000> : vector<8xf32>
    %35 = vector.multi_reduction <maximumf>, %34, %cst_29 [1] : vector<8x8xf32> to vector<8xf32>
    %36 = vector.shape_cast %35 : vector<8xf32> to vector<8x1xf32>
    %37 = vector.broadcast %36 : vector<8x1xf32> to vector<8x8xf32>
    %38 = arith.subf %34, %37 : vector<8x8xf32>
    %39 = math.exp %38 : vector<8x8xf32>
    %cst_30 = arith.constant dense<0.000000e+00> : vector<8xf32>
    %40 = vector.multi_reduction <add>, %39, %cst_30 [1] : vector<8x8xf32> to vector<8xf32>
    %41 = vector.shape_cast %40 : vector<8xf32> to vector<8x1xf32>
    %42 = vector.broadcast %41 : vector<8x1xf32> to vector<8x8xf32>
    %43 = arith.divf %39, %42 : vector<8x8xf32>
    %cst_31 = arith.constant dense<0.000000e+00> : vector<8x8xf32>
    %44 = tpu.matmul %43, %28, %cst_31 {dimension_numbers = #tpu.dot_dimension_numbers<[1], [0], [0], [1], [0, 0, 1, 1], [], []>} : vector<8x8xf32>, vector<8x8xf32>, vector<8x8xf32> -> vector<8x8xf32>
    %c0_32 = arith.constant 0 : index
    %c0_33 = arith.constant 0 : index
    %c0_34 = arith.constant 0 : index
    %45 = vector.load %arg9[%c0_32, %c0_33, %c0_34] : memref<8x8x32xf32, #tpu.memory_space<vmem>>, vector<1x8x32xf32>
    %46 = vector.shape_cast %45 : vector<1x8x32xf32> to vector<8x32xf32>
    %cst_35 = arith.constant dense<0.000000e+00> : vector<8x32xf32>
    %47 = tpu.matmul %44, %46, %cst_35 {dimension_numbers = #tpu.dot_dimension_numbers<[1], [0], [0], [1], [0, 0, 1, 1], [], []>} : vector<8x8xf32>, vector<8x32xf32>, vector<8x32xf32> -> vector<8x32xf32>
    %48 = arith.addf %7, %47 : vector<8x32xf32>
    %c1 = arith.constant 1 : index
    %c0_36 = arith.constant 0 : index
    %c0_37 = arith.constant 0 : index
    %49 = vector.load %arg3[%c1, %c0_36, %c0_37] : memref<8x32x8xf32, #tpu.memory_space<vmem>>, vector<1x32x8xf32>
    %50 = vector.shape_cast %49 : vector<1x32x8xf32> to vector<32x8xf32>
    %cst_38 = arith.constant dense<0.000000e+00> : vector<8x8xf32>
    %51 = tpu.matmul %1, %50, %cst_38 {dimension_numbers = #tpu.dot_dimension_numbers<[1], [0], [0], [1], [0, 0, 1, 1], [], []>} : vector<8x32xf32>, vector<32x8xf32>, vector<8x8xf32> -> vector<8x8xf32>
    %c1_39 = arith.constant 1 : index
    %c0_40 = arith.constant 0 : index
    %c0_41 = arith.constant 0 : index
    %52 = vector.load %arg4[%c1_39, %c0_40, %c0_41] : memref<8x1x8xf32, #tpu.memory_space<vmem>>, vector<1x1x8xf32>
    %53 = vector.shape_cast %52 : vector<1x1x8xf32> to vector<1x8xf32>
    %54 = vector.broadcast %53 : vector<1x8xf32> to vector<8x8xf32>
    %55 = arith.addf %51, %54 : vector<8x8xf32>
    %c1_42 = arith.constant 1 : index
    %c0_43 = arith.constant 0 : index
    %c0_44 = arith.constant 0 : index
    %56 = vector.load %arg5[%c1_42, %c0_43, %c0_44] : memref<8x32x8xf32, #tpu.memory_space<vmem>>, vector<1x32x8xf32>
    %57 = vector.shape_cast %56 : vector<1x32x8xf32> to vector<32x8xf32>
    %cst_45 = arith.constant dense<0.000000e+00> : vector<8x8xf32>
    %58 = tpu.matmul %1, %57, %cst_45 {dimension_numbers = #tpu.dot_dimension_numbers<[1], [0], [0], [1], [0, 0, 1, 1], [], []>} : vector<8x32xf32>, vector<32x8xf32>, vector<8x8xf32> -> vector<8x8xf32>
    %c1_46 = arith.constant 1 : index
    %c0_47 = arith.constant 0 : index
    %c0_48 = arith.constant 0 : index
    %59 = vector.load %arg6[%c1_46, %c0_47, %c0_48] : memref<8x1x8xf32, #tpu.memory_space<vmem>>, vector<1x1x8xf32>
    %60 = vector.shape_cast %59 : vector<1x1x8xf32> to vector<1x8xf32>
    %61 = vector.broadcast %60 : vector<1x8xf32> to vector<8x8xf32>
    %62 = arith.addf %58, %61 : vector<8x8xf32>
    %c1_49 = arith.constant 1 : index
    %c0_50 = arith.constant 0 : index
    %c0_51 = arith.constant 0 : index
    %63 = vector.load %arg7[%c1_49, %c0_50, %c0_51] : memref<8x32x8xf32, #tpu.memory_space<vmem>>, vector<1x32x8xf32>
    %64 = vector.shape_cast %63 : vector<1x32x8xf32> to vector<32x8xf32>
    %cst_52 = arith.constant dense<0.000000e+00> : vector<8x8xf32>
    %65 = tpu.matmul %1, %64, %cst_52 {dimension_numbers = #tpu.dot_dimension_numbers<[1], [0], [0], [1], [0, 0, 1, 1], [], []>} : vector<8x32xf32>, vector<32x8xf32>, vector<8x8xf32> -> vector<8x8xf32>
    %c1_53 = arith.constant 1 : index
    %c0_54 = arith.constant 0 : index
    %c0_55 = arith.constant 0 : index
    %66 = vector.load %arg8[%c1_53, %c0_54, %c0_55] : memref<8x1x8xf32, #tpu.memory_space<vmem>>, vector<1x1x8xf32>
    %67 = vector.shape_cast %66 : vector<1x1x8xf32> to vector<1x8xf32>
    %68 = vector.broadcast %67 : vector<1x8xf32> to vector<8x8xf32>
    %69 = arith.addf %65, %68 : vector<8x8xf32>
    %70 = tpu.transpose %62, [1, 0] : vector<8x8xf32> -> vector<8x8xf32>
    %cst_56 = arith.constant dense<0.000000e+00> : vector<8x8xf32>
    %71 = tpu.matmul %55, %70, %cst_56 {dimension_numbers = #tpu.dot_dimension_numbers<[1], [0], [0], [1], [0, 0, 1, 1], [], []>} : vector<8x8xf32>, vector<8x8xf32>, vector<8x8xf32> -> vector<8x8xf32>
    %cst_57 = arith.constant 0.353553385 : f32
    %72 = vector.broadcast %cst_57 : f32 to vector<8x8xf32>
    %73 = arith.mulf %71, %72 : vector<8x8xf32>
    %cst_58 = arith.constant -1.000000e+30 : f32
    %74 = vector.broadcast %cst_58 : f32 to vector<8x8xf32>
    %75 = arith.select %6, %73, %74 : vector<8x8xi1>, vector<8x8xf32>
    %cst_59 = arith.constant dense<0xFF800000> : vector<8xf32>
    %76 = vector.multi_reduction <maximumf>, %75, %cst_59 [1] : vector<8x8xf32> to vector<8xf32>
    %77 = vector.shape_cast %76 : vector<8xf32> to vector<8x1xf32>
    %78 = vector.broadcast %77 : vector<8x1xf32> to vector<8x8xf32>
    %79 = arith.subf %75, %78 : vector<8x8xf32>
    %80 = math.exp %79 : vector<8x8xf32>
    %cst_60 = arith.constant dense<0.000000e+00> : vector<8xf32>
    %81 = vector.multi_reduction <add>, %80, %cst_60 [1] : vector<8x8xf32> to vector<8xf32>
    %82 = vector.shape_cast %81 : vector<8xf32> to vector<8x1xf32>
    %83 = vector.broadcast %82 : vector<8x1xf32> to vector<8x8xf32>
    %84 = arith.divf %80, %83 : vector<8x8xf32>
    %cst_61 = arith.constant dense<0.000000e+00> : vector<8x8xf32>
    %85 = tpu.matmul %84, %69, %cst_61 {dimension_numbers = #tpu.dot_dimension_numbers<[1], [0], [0], [1], [0, 0, 1, 1], [], []>} : vector<8x8xf32>, vector<8x8xf32>, vector<8x8xf32> -> vector<8x8xf32>
    %c1_62 = arith.constant 1 : index
    %c0_63 = arith.constant 0 : index
    %c0_64 = arith.constant 0 : index
    %86 = vector.load %arg9[%c1_62, %c0_63, %c0_64] : memref<8x8x32xf32, #tpu.memory_space<vmem>>, vector<1x8x32xf32>
    %87 = vector.shape_cast %86 : vector<1x8x32xf32> to vector<8x32xf32>
    %cst_65 = arith.constant dense<0.000000e+00> : vector<8x32xf32>
    %88 = tpu.matmul %85, %87, %cst_65 {dimension_numbers = #tpu.dot_dimension_numbers<[1], [0], [0], [1], [0, 0, 1, 1], [], []>} : vector<8x8xf32>, vector<8x32xf32>, vector<8x32xf32> -> vector<8x32xf32>
    %89 = arith.addf %48, %88 : vector<8x32xf32>
    %c2 = arith.constant 2 : index
    %c0_66 = arith.constant 0 : index
    %c0_67 = arith.constant 0 : index
    %90 = vector.load %arg3[%c2, %c0_66, %c0_67] : memref<8x32x8xf32, #tpu.memory_space<vmem>>, vector<1x32x8xf32>
    %91 = vector.shape_cast %90 : vector<1x32x8xf32> to vector<32x8xf32>
    %cst_68 = arith.constant dense<0.000000e+00> : vector<8x8xf32>
    %92 = tpu.matmul %1, %91, %cst_68 {dimension_numbers = #tpu.dot_dimension_numbers<[1], [0], [0], [1], [0, 0, 1, 1], [], []>} : vector<8x32xf32>, vector<32x8xf32>, vector<8x8xf32> -> vector<8x8xf32>
    %c2_69 = arith.constant 2 : index
    %c0_70 = arith.constant 0 : index
    %c0_71 = arith.constant 0 : index
    %93 = vector.load %arg4[%c2_69, %c0_70, %c0_71] : memref<8x1x8xf32, #tpu.memory_space<vmem>>, vector<1x1x8xf32>
    %94 = vector.shape_cast %93 : vector<1x1x8xf32> to vector<1x8xf32>
    %95 = vector.broadcast %94 : vector<1x8xf32> to vector<8x8xf32>
    %96 = arith.addf %92, %95 : vector<8x8xf32>
    %c2_72 = arith.constant 2 : index
    %c0_73 = arith.constant 0 : index
    %c0_74 = arith.constant 0 : index
    %97 = vector.load %arg5[%c2_72, %c0_73, %c0_74] : memref<8x32x8xf32, #tpu.memory_space<vmem>>, vector<1x32x8xf32>
    %98 = vector.shape_cast %97 : vector<1x32x8xf32> to vector<32x8xf32>
    %cst_75 = arith.constant dense<0.000000e+00> : vector<8x8xf32>
    %99 = tpu.matmul %1, %98, %cst_75 {dimension_numbers = #tpu.dot_dimension_numbers<[1], [0], [0], [1], [0, 0, 1, 1], [], []>} : vector<8x32xf32>, vector<32x8xf32>, vector<8x8xf32> -> vector<8x8xf32>
    %c2_76 = arith.constant 2 : index
    %c0_77 = arith.constant 0 : index
    %c0_78 = arith.constant 0 : index
    %100 = vector.load %arg6[%c2_76, %c0_77, %c0_78] : memref<8x1x8xf32, #tpu.memory_space<vmem>>, vector<1x1x8xf32>
    %101 = vector.shape_cast %100 : vector<1x1x8xf32> to vector<1x8xf32>
    %102 = vector.broadcast %101 : vector<1x8xf32> to vector<8x8xf32>
    %103 = arith.addf %99, %102 : vector<8x8xf32>
    %c2_79 = arith.constant 2 : index
    %c0_80 = arith.constant 0 : index
    %c0_81 = arith.constant 0 : index
    %104 = vector.load %arg7[%c2_79, %c0_80, %c0_81] : memref<8x32x8xf32, #tpu.memory_space<vmem>>, vector<1x32x8xf32>
    %105 = vector.shape_cast %104 : vector<1x32x8xf32> to vector<32x8xf32>
    %cst_82 = arith.constant dense<0.000000e+00> : vector<8x8xf32>
    %106 = tpu.matmul %1, %105, %cst_82 {dimension_numbers = #tpu.dot_dimension_numbers<[1], [0], [0], [1], [0, 0, 1, 1], [], []>} : vector<8x32xf32>, vector<32x8xf32>, vector<8x8xf32> -> vector<8x8xf32>
    %c2_83 = arith.constant 2 : index
    %c0_84 = arith.constant 0 : index
    %c0_85 = arith.constant 0 : index
    %107 = vector.load %arg8[%c2_83, %c0_84, %c0_85] : memref<8x1x8xf32, #tpu.memory_space<vmem>>, vector<1x1x8xf32>
    %108 = vector.shape_cast %107 : vector<1x1x8xf32> to vector<1x8xf32>
    %109 = vector.broadcast %108 : vector<1x8xf32> to vector<8x8xf32>
    %110 = arith.addf %106, %109 : vector<8x8xf32>
    %111 = tpu.transpose %103, [1, 0] : vector<8x8xf32> -> vector<8x8xf32>
    %cst_86 = arith.constant dense<0.000000e+00> : vector<8x8xf32>
    %112 = tpu.matmul %96, %111, %cst_86 {dimension_numbers = #tpu.dot_dimension_numbers<[1], [0], [0], [1], [0, 0, 1, 1], [], []>} : vector<8x8xf32>, vector<8x8xf32>, vector<8x8xf32> -> vector<8x8xf32>
    %cst_87 = arith.constant 0.353553385 : f32
    %113 = vector.broadcast %cst_87 : f32 to vector<8x8xf32>
    %114 = arith.mulf %112, %113 : vector<8x8xf32>
    %cst_88 = arith.constant -1.000000e+30 : f32
    %115 = vector.broadcast %cst_88 : f32 to vector<8x8xf32>
    %116 = arith.select %6, %114, %115 : vector<8x8xi1>, vector<8x8xf32>
    %cst_89 = arith.constant dense<0xFF800000> : vector<8xf32>
    %117 = vector.multi_reduction <maximumf>, %116, %cst_89 [1] : vector<8x8xf32> to vector<8xf32>
    %118 = vector.shape_cast %117 : vector<8xf32> to vector<8x1xf32>
    %119 = vector.broadcast %118 : vector<8x1xf32> to vector<8x8xf32>
    %120 = arith.subf %116, %119 : vector<8x8xf32>
    %121 = math.exp %120 : vector<8x8xf32>
    %cst_90 = arith.constant dense<0.000000e+00> : vector<8xf32>
    %122 = vector.multi_reduction <add>, %121, %cst_90 [1] : vector<8x8xf32> to vector<8xf32>
    %123 = vector.shape_cast %122 : vector<8xf32> to vector<8x1xf32>
    %124 = vector.broadcast %123 : vector<8x1xf32> to vector<8x8xf32>
    %125 = arith.divf %121, %124 : vector<8x8xf32>
    %cst_91 = arith.constant dense<0.000000e+00> : vector<8x8xf32>
    %126 = tpu.matmul %125, %110, %cst_91 {dimension_numbers = #tpu.dot_dimension_numbers<[1], [0], [0], [1], [0, 0, 1, 1], [], []>} : vector<8x8xf32>, vector<8x8xf32>, vector<8x8xf32> -> vector<8x8xf32>
    %c2_92 = arith.constant 2 : index
    %c0_93 = arith.constant 0 : index
    %c0_94 = arith.constant 0 : index
    %127 = vector.load %arg9[%c2_92, %c0_93, %c0_94] : memref<8x8x32xf32, #tpu.memory_space<vmem>>, vector<1x8x32xf32>
    %128 = vector.shape_cast %127 : vector<1x8x32xf32> to vector<8x32xf32>
    %cst_95 = arith.constant dense<0.000000e+00> : vector<8x32xf32>
    %129 = tpu.matmul %126, %128, %cst_95 {dimension_numbers = #tpu.dot_dimension_numbers<[1], [0], [0], [1], [0, 0, 1, 1], [], []>} : vector<8x8xf32>, vector<8x32xf32>, vector<8x32xf32> -> vector<8x32xf32>
    %130 = arith.addf %89, %129 : vector<8x32xf32>
    %c3 = arith.constant 3 : index
    %c0_96 = arith.constant 0 : index
    %c0_97 = arith.constant 0 : index
    %131 = vector.load %arg3[%c3, %c0_96, %c0_97] : memref<8x32x8xf32, #tpu.memory_space<vmem>>, vector<1x32x8xf32>
    %132 = vector.shape_cast %131 : vector<1x32x8xf32> to vector<32x8xf32>
    %cst_98 = arith.constant dense<0.000000e+00> : vector<8x8xf32>
    %133 = tpu.matmul %1, %132, %cst_98 {dimension_numbers = #tpu.dot_dimension_numbers<[1], [0], [0], [1], [0, 0, 1, 1], [], []>} : vector<8x32xf32>, vector<32x8xf32>, vector<8x8xf32> -> vector<8x8xf32>
    %c3_99 = arith.constant 3 : index
    %c0_100 = arith.constant 0 : index
    %c0_101 = arith.constant 0 : index
    %134 = vector.load %arg4[%c3_99, %c0_100, %c0_101] : memref<8x1x8xf32, #tpu.memory_space<vmem>>, vector<1x1x8xf32>
    %135 = vector.shape_cast %134 : vector<1x1x8xf32> to vector<1x8xf32>
    %136 = vector.broadcast %135 : vector<1x8xf32> to vector<8x8xf32>
    %137 = arith.addf %133, %136 : vector<8x8xf32>
    %c3_102 = arith.constant 3 : index
    %c0_103 = arith.constant 0 : index
    %c0_104 = arith.constant 0 : index
    %138 = vector.load %arg5[%c3_102, %c0_103, %c0_104] : memref<8x32x8xf32, #tpu.memory_space<vmem>>, vector<1x32x8xf32>
    %139 = vector.shape_cast %138 : vector<1x32x8xf32> to vector<32x8xf32>
    %cst_105 = arith.constant dense<0.000000e+00> : vector<8x8xf32>
    %140 = tpu.matmul %1, %139, %cst_105 {dimension_numbers = #tpu.dot_dimension_numbers<[1], [0], [0], [1], [0, 0, 1, 1], [], []>} : vector<8x32xf32>, vector<32x8xf32>, vector<8x8xf32> -> vector<8x8xf32>
    %c3_106 = arith.constant 3 : index
    %c0_107 = arith.constant 0 : index
    %c0_108 = arith.constant 0 : index
    %141 = vector.load %arg6[%c3_106, %c0_107, %c0_108] : memref<8x1x8xf32, #tpu.memory_space<vmem>>, vector<1x1x8xf32>
    %142 = vector.shape_cast %141 : vector<1x1x8xf32> to vector<1x8xf32>
    %143 = vector.broadcast %142 : vector<1x8xf32> to vector<8x8xf32>
    %144 = arith.addf %140, %143 : vector<8x8xf32>
    %c3_109 = arith.constant 3 : index
    %c0_110 = arith.constant 0 : index
    %c0_111 = arith.constant 0 : index
    %145 = vector.load %arg7[%c3_109, %c0_110, %c0_111] : memref<8x32x8xf32, #tpu.memory_space<vmem>>, vector<1x32x8xf32>
    %146 = vector.shape_cast %145 : vector<1x32x8xf32> to vector<32x8xf32>
    %cst_112 = arith.constant dense<0.000000e+00> : vector<8x8xf32>
    %147 = tpu.matmul %1, %146, %cst_112 {dimension_numbers = #tpu.dot_dimension_numbers<[1], [0], [0], [1], [0, 0, 1, 1], [], []>} : vector<8x32xf32>, vector<32x8xf32>, vector<8x8xf32> -> vector<8x8xf32>
    %c3_113 = arith.constant 3 : index
    %c0_114 = arith.constant 0 : index
    %c0_115 = arith.constant 0 : index
    %148 = vector.load %arg8[%c3_113, %c0_114, %c0_115] : memref<8x1x8xf32, #tpu.memory_space<vmem>>, vector<1x1x8xf32>
    %149 = vector.shape_cast %148 : vector<1x1x8xf32> to vector<1x8xf32>
    %150 = vector.broadcast %149 : vector<1x8xf32> to vector<8x8xf32>
    %151 = arith.addf %147, %150 : vector<8x8xf32>
    %152 = tpu.transpose %144, [1, 0] : vector<8x8xf32> -> vector<8x8xf32>
    %cst_116 = arith.constant dense<0.000000e+00> : vector<8x8xf32>
    %153 = tpu.matmul %137, %152, %cst_116 {dimension_numbers = #tpu.dot_dimension_numbers<[1], [0], [0], [1], [0, 0, 1, 1], [], []>} : vector<8x8xf32>, vector<8x8xf32>, vector<8x8xf32> -> vector<8x8xf32>
    %cst_117 = arith.constant 0.353553385 : f32
    %154 = vector.broadcast %cst_117 : f32 to vector<8x8xf32>
    %155 = arith.mulf %153, %154 : vector<8x8xf32>
    %cst_118 = arith.constant -1.000000e+30 : f32
    %156 = vector.broadcast %cst_118 : f32 to vector<8x8xf32>
    %157 = arith.select %6, %155, %156 : vector<8x8xi1>, vector<8x8xf32>
    %cst_119 = arith.constant dense<0xFF800000> : vector<8xf32>
    %158 = vector.multi_reduction <maximumf>, %157, %cst_119 [1] : vector<8x8xf32> to vector<8xf32>
    %159 = vector.shape_cast %158 : vector<8xf32> to vector<8x1xf32>
    %160 = vector.broadcast %159 : vector<8x1xf32> to vector<8x8xf32>
    %161 = arith.subf %157, %160 : vector<8x8xf32>
    %162 = math.exp %161 : vector<8x8xf32>
    %cst_120 = arith.constant dense<0.000000e+00> : vector<8xf32>
    %163 = vector.multi_reduction <add>, %162, %cst_120 [1] : vector<8x8xf32> to vector<8xf32>
    %164 = vector.shape_cast %163 : vector<8xf32> to vector<8x1xf32>
    %165 = vector.broadcast %164 : vector<8x1xf32> to vector<8x8xf32>
    %166 = arith.divf %162, %165 : vector<8x8xf32>
    %cst_121 = arith.constant dense<0.000000e+00> : vector<8x8xf32>
    %167 = tpu.matmul %166, %151, %cst_121 {dimension_numbers = #tpu.dot_dimension_numbers<[1], [0], [0], [1], [0, 0, 1, 1], [], []>} : vector<8x8xf32>, vector<8x8xf32>, vector<8x8xf32> -> vector<8x8xf32>
    %c3_122 = arith.constant 3 : index
    %c0_123 = arith.constant 0 : index
    %c0_124 = arith.constant 0 : index
    %168 = vector.load %arg9[%c3_122, %c0_123, %c0_124] : memref<8x8x32xf32, #tpu.memory_space<vmem>>, vector<1x8x32xf32>
    %169 = vector.shape_cast %168 : vector<1x8x32xf32> to vector<8x32xf32>
    %cst_125 = arith.constant dense<0.000000e+00> : vector<8x32xf32>
    %170 = tpu.matmul %167, %169, %cst_125 {dimension_numbers = #tpu.dot_dimension_numbers<[1], [0], [0], [1], [0, 0, 1, 1], [], []>} : vector<8x8xf32>, vector<8x32xf32>, vector<8x32xf32> -> vector<8x32xf32>
    %171 = arith.addf %130, %170 : vector<8x32xf32>
    %c0_126 = arith.constant 0 : index
    %c0_127 = arith.constant 0 : index
    %c0_128 = arith.constant 0 : index
    %172 = vector.load %arg10[%c0_126, %c0_127, %c0_128] : memref<2x1x32xf32, #tpu.memory_space<vmem>>, vector<1x1x32xf32>
    %173 = vector.shape_cast %172 : vector<1x1x32xf32> to vector<1x32xf32>
    %174 = vector.broadcast %173 : vector<1x32xf32> to vector<8x32xf32>
    %175 = arith.addf %171, %174 : vector<8x32xf32>
    %176 = arith.addf %1, %175 : vector<8x32xf32>
    %c0_129 = arith.constant 0 : index
    %c0_130 = arith.constant 0 : index
    %c0_131 = arith.constant 0 : index
    %177 = vector.load %arg11[%c0_129, %c0_130, %c0_131] : memref<3x1x32xf32, #tpu.memory_space<vmem>>, vector<1x1x32xf32>
    %178 = vector.shape_cast %177 : vector<1x1x32xf32> to vector<1x32xf32>
    %c0_132 = arith.constant 0 : index
    %c0_133 = arith.constant 0 : index
    %c0_134 = arith.constant 0 : index
    %179 = vector.load %arg12[%c0_132, %c0_133, %c0_134] : memref<3x1x32xf32, #tpu.memory_space<vmem>>, vector<1x1x32xf32>
    %180 = vector.shape_cast %179 : vector<1x1x32xf32> to vector<1x32xf32>
    %cst_135 = arith.constant dense<0.000000e+00> : vector<8xf32>
    %181 = vector.multi_reduction <add>, %176, %cst_135 [1] : vector<8x32xf32> to vector<8xf32>
    %182 = vector.shape_cast %181 : vector<8xf32> to vector<8x1xf32>
    %cst_136 = arith.constant 3.200000e+01 : f32
    %183 = vector.broadcast %cst_136 : f32 to vector<8x1xf32>
    %184 = arith.divf %182, %183 : vector<8x1xf32>
    %185 = vector.broadcast %184 : vector<8x1xf32> to vector<8x32xf32>
    %186 = arith.subf %176, %185 : vector<8x32xf32>
    %187 = arith.mulf %186, %186 : vector<8x32xf32>
    %cst_137 = arith.constant dense<0.000000e+00> : vector<8xf32>
    %188 = vector.multi_reduction <add>, %187, %cst_137 [1] : vector<8x32xf32> to vector<8xf32>
    %189 = vector.shape_cast %188 : vector<8xf32> to vector<8x1xf32>
    %cst_138 = arith.constant 3.200000e+01 : f32
    %190 = vector.broadcast %cst_138 : f32 to vector<8x1xf32>
    %191 = arith.divf %189, %190 : vector<8x1xf32>
    %cst_139 = arith.constant 9.99999974E-6 : f32
    %192 = vector.broadcast %cst_139 : f32 to vector<8x1xf32>
    %193 = arith.addf %191, %192 : vector<8x1xf32>
    %194 = math.rsqrt %193 : vector<8x1xf32>
    %195 = vector.broadcast %194 : vector<8x1xf32> to vector<8x32xf32>
    %196 = arith.mulf %186, %195 : vector<8x32xf32>
    %197 = vector.broadcast %178 : vector<1x32xf32> to vector<8x32xf32>
    %198 = arith.mulf %196, %197 : vector<8x32xf32>
    %199 = vector.broadcast %180 : vector<1x32xf32> to vector<8x32xf32>
    %200 = arith.addf %198, %199 : vector<8x32xf32>
    %cst_140 = arith.constant 0.000000e+00 : f32
    %201 = vector.broadcast %cst_140 : f32 to vector<8x32xf32>
    %c4 = arith.constant 4 : index
    %c0_141 = arith.constant 0 : index
    %c0_142 = arith.constant 0 : index
    %202 = vector.load %arg3[%c4, %c0_141, %c0_142] : memref<8x32x8xf32, #tpu.memory_space<vmem>>, vector<1x32x8xf32>
    %203 = vector.shape_cast %202 : vector<1x32x8xf32> to vector<32x8xf32>
    %cst_143 = arith.constant dense<0.000000e+00> : vector<8x8xf32>
    %204 = tpu.matmul %200, %203, %cst_143 {dimension_numbers = #tpu.dot_dimension_numbers<[1], [0], [0], [1], [0, 0, 1, 1], [], []>} : vector<8x32xf32>, vector<32x8xf32>, vector<8x8xf32> -> vector<8x8xf32>
    %c4_144 = arith.constant 4 : index
    %c0_145 = arith.constant 0 : index
    %c0_146 = arith.constant 0 : index
    %205 = vector.load %arg4[%c4_144, %c0_145, %c0_146] : memref<8x1x8xf32, #tpu.memory_space<vmem>>, vector<1x1x8xf32>
    %206 = vector.shape_cast %205 : vector<1x1x8xf32> to vector<1x8xf32>
    %207 = vector.broadcast %206 : vector<1x8xf32> to vector<8x8xf32>
    %208 = arith.addf %204, %207 : vector<8x8xf32>
    %c4_147 = arith.constant 4 : index
    %c0_148 = arith.constant 0 : index
    %c0_149 = arith.constant 0 : index
    %209 = vector.load %arg5[%c4_147, %c0_148, %c0_149] : memref<8x32x8xf32, #tpu.memory_space<vmem>>, vector<1x32x8xf32>
    %210 = vector.shape_cast %209 : vector<1x32x8xf32> to vector<32x8xf32>
    %cst_150 = arith.constant dense<0.000000e+00> : vector<16x8xf32>
    %211 = tpu.matmul %3, %210, %cst_150 {dimension_numbers = #tpu.dot_dimension_numbers<[1], [0], [0], [1], [0, 0, 1, 1], [], []>} : vector<16x32xf32>, vector<32x8xf32>, vector<16x8xf32> -> vector<16x8xf32>
    %c4_151 = arith.constant 4 : index
    %c0_152 = arith.constant 0 : index
    %c0_153 = arith.constant 0 : index
    %212 = vector.load %arg6[%c4_151, %c0_152, %c0_153] : memref<8x1x8xf32, #tpu.memory_space<vmem>>, vector<1x1x8xf32>
    %213 = vector.shape_cast %212 : vector<1x1x8xf32> to vector<1x8xf32>
    %214 = vector.broadcast %213 : vector<1x8xf32> to vector<16x8xf32>
    %215 = arith.addf %211, %214 : vector<16x8xf32>
    %c4_154 = arith.constant 4 : index
    %c0_155 = arith.constant 0 : index
    %c0_156 = arith.constant 0 : index
    %216 = vector.load %arg7[%c4_154, %c0_155, %c0_156] : memref<8x32x8xf32, #tpu.memory_space<vmem>>, vector<1x32x8xf32>
    %217 = vector.shape_cast %216 : vector<1x32x8xf32> to vector<32x8xf32>
    %cst_157 = arith.constant dense<0.000000e+00> : vector<16x8xf32>
    %218 = tpu.matmul %3, %217, %cst_157 {dimension_numbers = #tpu.dot_dimension_numbers<[1], [0], [0], [1], [0, 0, 1, 1], [], []>} : vector<16x32xf32>, vector<32x8xf32>, vector<16x8xf32> -> vector<16x8xf32>
    %c4_158 = arith.constant 4 : index
    %c0_159 = arith.constant 0 : index
    %c0_160 = arith.constant 0 : index
    %219 = vector.load %arg8[%c4_158, %c0_159, %c0_160] : memref<8x1x8xf32, #tpu.memory_space<vmem>>, vector<1x1x8xf32>
    %220 = vector.shape_cast %219 : vector<1x1x8xf32> to vector<1x8xf32>
    %221 = vector.broadcast %220 : vector<1x8xf32> to vector<16x8xf32>
    %222 = arith.addf %218, %221 : vector<16x8xf32>
    %223 = tpu.transpose %215, [1, 0] : vector<16x8xf32> -> vector<8x16xf32>
    %cst_161 = arith.constant dense<0.000000e+00> : vector<8x16xf32>
    %224 = tpu.matmul %208, %223, %cst_161 {dimension_numbers = #tpu.dot_dimension_numbers<[1], [0], [0], [1], [0, 0, 1, 1], [], []>} : vector<8x8xf32>, vector<8x16xf32>, vector<8x16xf32> -> vector<8x16xf32>
    %cst_162 = arith.constant 0.353553385 : f32
    %225 = vector.broadcast %cst_162 : f32 to vector<8x16xf32>
    %226 = arith.mulf %224, %225 : vector<8x16xf32>
    %cst_163 = arith.constant dense<0xFF800000> : vector<8xf32>
    %227 = vector.multi_reduction <maximumf>, %226, %cst_163 [1] : vector<8x16xf32> to vector<8xf32>
    %228 = vector.shape_cast %227 : vector<8xf32> to vector<8x1xf32>
    %229 = vector.broadcast %228 : vector<8x1xf32> to vector<8x16xf32>
    %230 = arith.subf %226, %229 : vector<8x16xf32>
    %231 = math.exp %230 : vector<8x16xf32>
    %cst_164 = arith.constant dense<0.000000e+00> : vector<8xf32>
    %232 = vector.multi_reduction <add>, %231, %cst_164 [1] : vector<8x16xf32> to vector<8xf32>
    %233 = vector.shape_cast %232 : vector<8xf32> to vector<8x1xf32>
    %234 = vector.broadcast %233 : vector<8x1xf32> to vector<8x16xf32>
    %235 = arith.divf %231, %234 : vector<8x16xf32>
    %cst_165 = arith.constant dense<0.000000e+00> : vector<8x8xf32>
    %236 = tpu.matmul %235, %222, %cst_165 {dimension_numbers = #tpu.dot_dimension_numbers<[1], [0], [0], [1], [0, 0, 1, 1], [], []>} : vector<8x16xf32>, vector<16x8xf32>, vector<8x8xf32> -> vector<8x8xf32>
    %c4_166 = arith.constant 4 : index
    %c0_167 = arith.constant 0 : index
    %c0_168 = arith.constant 0 : index
    %237 = vector.load %arg9[%c4_166, %c0_167, %c0_168] : memref<8x8x32xf32, #tpu.memory_space<vmem>>, vector<1x8x32xf32>
    %238 = vector.shape_cast %237 : vector<1x8x32xf32> to vector<8x32xf32>
    %cst_169 = arith.constant dense<0.000000e+00> : vector<8x32xf32>
    %239 = tpu.matmul %236, %238, %cst_169 {dimension_numbers = #tpu.dot_dimension_numbers<[1], [0], [0], [1], [0, 0, 1, 1], [], []>} : vector<8x8xf32>, vector<8x32xf32>, vector<8x32xf32> -> vector<8x32xf32>
    %240 = arith.addf %201, %239 : vector<8x32xf32>
    %c5 = arith.constant 5 : index
    %c0_170 = arith.constant 0 : index
    %c0_171 = arith.constant 0 : index
    %241 = vector.load %arg3[%c5, %c0_170, %c0_171] : memref<8x32x8xf32, #tpu.memory_space<vmem>>, vector<1x32x8xf32>
    %242 = vector.shape_cast %241 : vector<1x32x8xf32> to vector<32x8xf32>
    %cst_172 = arith.constant dense<0.000000e+00> : vector<8x8xf32>
    %243 = tpu.matmul %200, %242, %cst_172 {dimension_numbers = #tpu.dot_dimension_numbers<[1], [0], [0], [1], [0, 0, 1, 1], [], []>} : vector<8x32xf32>, vector<32x8xf32>, vector<8x8xf32> -> vector<8x8xf32>
    %c5_173 = arith.constant 5 : index
    %c0_174 = arith.constant 0 : index
    %c0_175 = arith.constant 0 : index
    %244 = vector.load %arg4[%c5_173, %c0_174, %c0_175] : memref<8x1x8xf32, #tpu.memory_space<vmem>>, vector<1x1x8xf32>
    %245 = vector.shape_cast %244 : vector<1x1x8xf32> to vector<1x8xf32>
    %246 = vector.broadcast %245 : vector<1x8xf32> to vector<8x8xf32>
    %247 = arith.addf %243, %246 : vector<8x8xf32>
    %c5_176 = arith.constant 5 : index
    %c0_177 = arith.constant 0 : index
    %c0_178 = arith.constant 0 : index
    %248 = vector.load %arg5[%c5_176, %c0_177, %c0_178] : memref<8x32x8xf32, #tpu.memory_space<vmem>>, vector<1x32x8xf32>
    %249 = vector.shape_cast %248 : vector<1x32x8xf32> to vector<32x8xf32>
    %cst_179 = arith.constant dense<0.000000e+00> : vector<16x8xf32>
    %250 = tpu.matmul %3, %249, %cst_179 {dimension_numbers = #tpu.dot_dimension_numbers<[1], [0], [0], [1], [0, 0, 1, 1], [], []>} : vector<16x32xf32>, vector<32x8xf32>, vector<16x8xf32> -> vector<16x8xf32>
    %c5_180 = arith.constant 5 : index
    %c0_181 = arith.constant 0 : index
    %c0_182 = arith.constant 0 : index
    %251 = vector.load %arg6[%c5_180, %c0_181, %c0_182] : memref<8x1x8xf32, #tpu.memory_space<vmem>>, vector<1x1x8xf32>
    %252 = vector.shape_cast %251 : vector<1x1x8xf32> to vector<1x8xf32>
    %253 = vector.broadcast %252 : vector<1x8xf32> to vector<16x8xf32>
    %254 = arith.addf %250, %253 : vector<16x8xf32>
    %c5_183 = arith.constant 5 : index
    %c0_184 = arith.constant 0 : index
    %c0_185 = arith.constant 0 : index
    %255 = vector.load %arg7[%c5_183, %c0_184, %c0_185] : memref<8x32x8xf32, #tpu.memory_space<vmem>>, vector<1x32x8xf32>
    %256 = vector.shape_cast %255 : vector<1x32x8xf32> to vector<32x8xf32>
    %cst_186 = arith.constant dense<0.000000e+00> : vector<16x8xf32>
    %257 = tpu.matmul %3, %256, %cst_186 {dimension_numbers = #tpu.dot_dimension_numbers<[1], [0], [0], [1], [0, 0, 1, 1], [], []>} : vector<16x32xf32>, vector<32x8xf32>, vector<16x8xf32> -> vector<16x8xf32>
    %c5_187 = arith.constant 5 : index
    %c0_188 = arith.constant 0 : index
    %c0_189 = arith.constant 0 : index
    %258 = vector.load %arg8[%c5_187, %c0_188, %c0_189] : memref<8x1x8xf32, #tpu.memory_space<vmem>>, vector<1x1x8xf32>
    %259 = vector.shape_cast %258 : vector<1x1x8xf32> to vector<1x8xf32>
    %260 = vector.broadcast %259 : vector<1x8xf32> to vector<16x8xf32>
    %261 = arith.addf %257, %260 : vector<16x8xf32>
    %262 = tpu.transpose %254, [1, 0] : vector<16x8xf32> -> vector<8x16xf32>
    %cst_190 = arith.constant dense<0.000000e+00> : vector<8x16xf32>
    %263 = tpu.matmul %247, %262, %cst_190 {dimension_numbers = #tpu.dot_dimension_numbers<[1], [0], [0], [1], [0, 0, 1, 1], [], []>} : vector<8x8xf32>, vector<8x16xf32>, vector<8x16xf32> -> vector<8x16xf32>
    %cst_191 = arith.constant 0.353553385 : f32
    %264 = vector.broadcast %cst_191 : f32 to vector<8x16xf32>
    %265 = arith.mulf %263, %264 : vector<8x16xf32>
    %cst_192 = arith.constant dense<0xFF800000> : vector<8xf32>
    %266 = vector.multi_reduction <maximumf>, %265, %cst_192 [1] : vector<8x16xf32> to vector<8xf32>
    %267 = vector.shape_cast %266 : vector<8xf32> to vector<8x1xf32>
    %268 = vector.broadcast %267 : vector<8x1xf32> to vector<8x16xf32>
    %269 = arith.subf %265, %268 : vector<8x16xf32>
    %270 = math.exp %269 : vector<8x16xf32>
    %cst_193 = arith.constant dense<0.000000e+00> : vector<8xf32>
    %271 = vector.multi_reduction <add>, %270, %cst_193 [1] : vector<8x16xf32> to vector<8xf32>
    %272 = vector.shape_cast %271 : vector<8xf32> to vector<8x1xf32>
    %273 = vector.broadcast %272 : vector<8x1xf32> to vector<8x16xf32>
    %274 = arith.divf %270, %273 : vector<8x16xf32>
    %cst_194 = arith.constant dense<0.000000e+00> : vector<8x8xf32>
    %275 = tpu.matmul %274, %261, %cst_194 {dimension_numbers = #tpu.dot_dimension_numbers<[1], [0], [0], [1], [0, 0, 1, 1], [], []>} : vector<8x16xf32>, vector<16x8xf32>, vector<8x8xf32> -> vector<8x8xf32>
    %c5_195 = arith.constant 5 : index
    %c0_196 = arith.constant 0 : index
    %c0_197 = arith.constant 0 : index
    %276 = vector.load %arg9[%c5_195, %c0_196, %c0_197] : memref<8x8x32xf32, #tpu.memory_space<vmem>>, vector<1x8x32xf32>
    %277 = vector.shape_cast %276 : vector<1x8x32xf32> to vector<8x32xf32>
    %cst_198 = arith.constant dense<0.000000e+00> : vector<8x32xf32>
    %278 = tpu.matmul %275, %277, %cst_198 {dimension_numbers = #tpu.dot_dimension_numbers<[1], [0], [0], [1], [0, 0, 1, 1], [], []>} : vector<8x8xf32>, vector<8x32xf32>, vector<8x32xf32> -> vector<8x32xf32>
    %279 = arith.addf %240, %278 : vector<8x32xf32>
    %c6 = arith.constant 6 : index
    %c0_199 = arith.constant 0 : index
    %c0_200 = arith.constant 0 : index
    %280 = vector.load %arg3[%c6, %c0_199, %c0_200] : memref<8x32x8xf32, #tpu.memory_space<vmem>>, vector<1x32x8xf32>
    %281 = vector.shape_cast %280 : vector<1x32x8xf32> to vector<32x8xf32>
    %cst_201 = arith.constant dense<0.000000e+00> : vector<8x8xf32>
    %282 = tpu.matmul %200, %281, %cst_201 {dimension_numbers = #tpu.dot_dimension_numbers<[1], [0], [0], [1], [0, 0, 1, 1], [], []>} : vector<8x32xf32>, vector<32x8xf32>, vector<8x8xf32> -> vector<8x8xf32>
    %c6_202 = arith.constant 6 : index
    %c0_203 = arith.constant 0 : index
    %c0_204 = arith.constant 0 : index
    %283 = vector.load %arg4[%c6_202, %c0_203, %c0_204] : memref<8x1x8xf32, #tpu.memory_space<vmem>>, vector<1x1x8xf32>
    %284 = vector.shape_cast %283 : vector<1x1x8xf32> to vector<1x8xf32>
    %285 = vector.broadcast %284 : vector<1x8xf32> to vector<8x8xf32>
    %286 = arith.addf %282, %285 : vector<8x8xf32>
    %c6_205 = arith.constant 6 : index
    %c0_206 = arith.constant 0 : index
    %c0_207 = arith.constant 0 : index
    %287 = vector.load %arg5[%c6_205, %c0_206, %c0_207] : memref<8x32x8xf32, #tpu.memory_space<vmem>>, vector<1x32x8xf32>
    %288 = vector.shape_cast %287 : vector<1x32x8xf32> to vector<32x8xf32>
    %cst_208 = arith.constant dense<0.000000e+00> : vector<16x8xf32>
    %289 = tpu.matmul %3, %288, %cst_208 {dimension_numbers = #tpu.dot_dimension_numbers<[1], [0], [0], [1], [0, 0, 1, 1], [], []>} : vector<16x32xf32>, vector<32x8xf32>, vector<16x8xf32> -> vector<16x8xf32>
    %c6_209 = arith.constant 6 : index
    %c0_210 = arith.constant 0 : index
    %c0_211 = arith.constant 0 : index
    %290 = vector.load %arg6[%c6_209, %c0_210, %c0_211] : memref<8x1x8xf32, #tpu.memory_space<vmem>>, vector<1x1x8xf32>
    %291 = vector.shape_cast %290 : vector<1x1x8xf32> to vector<1x8xf32>
    %292 = vector.broadcast %291 : vector<1x8xf32> to vector<16x8xf32>
    %293 = arith.addf %289, %292 : vector<16x8xf32>
    %c6_212 = arith.constant 6 : index
    %c0_213 = arith.constant 0 : index
    %c0_214 = arith.constant 0 : index
    %294 = vector.load %arg7[%c6_212, %c0_213, %c0_214] : memref<8x32x8xf32, #tpu.memory_space<vmem>>, vector<1x32x8xf32>
    %295 = vector.shape_cast %294 : vector<1x32x8xf32> to vector<32x8xf32>
    %cst_215 = arith.constant dense<0.000000e+00> : vector<16x8xf32>
    %296 = tpu.matmul %3, %295, %cst_215 {dimension_numbers = #tpu.dot_dimension_numbers<[1], [0], [0], [1], [0, 0, 1, 1], [], []>} : vector<16x32xf32>, vector<32x8xf32>, vector<16x8xf32> -> vector<16x8xf32>
    %c6_216 = arith.constant 6 : index
    %c0_217 = arith.constant 0 : index
    %c0_218 = arith.constant 0 : index
    %297 = vector.load %arg8[%c6_216, %c0_217, %c0_218] : memref<8x1x8xf32, #tpu.memory_space<vmem>>, vector<1x1x8xf32>
    %298 = vector.shape_cast %297 : vector<1x1x8xf32> to vector<1x8xf32>
    %299 = vector.broadcast %298 : vector<1x8xf32> to vector<16x8xf32>
    %300 = arith.addf %296, %299 : vector<16x8xf32>
    %301 = tpu.transpose %293, [1, 0] : vector<16x8xf32> -> vector<8x16xf32>
    %cst_219 = arith.constant dense<0.000000e+00> : vector<8x16xf32>
    %302 = tpu.matmul %286, %301, %cst_219 {dimension_numbers = #tpu.dot_dimension_numbers<[1], [0], [0], [1], [0, 0, 1, 1], [], []>} : vector<8x8xf32>, vector<8x16xf32>, vector<8x16xf32> -> vector<8x16xf32>
    %cst_220 = arith.constant 0.353553385 : f32
    %303 = vector.broadcast %cst_220 : f32 to vector<8x16xf32>
    %304 = arith.mulf %302, %303 : vector<8x16xf32>
    %cst_221 = arith.constant dense<0xFF800000> : vector<8xf32>
    %305 = vector.multi_reduction <maximumf>, %304, %cst_221 [1] : vector<8x16xf32> to vector<8xf32>
    %306 = vector.shape_cast %305 : vector<8xf32> to vector<8x1xf32>
    %307 = vector.broadcast %306 : vector<8x1xf32> to vector<8x16xf32>
    %308 = arith.subf %304, %307 : vector<8x16xf32>
    %309 = math.exp %308 : vector<8x16xf32>
    %cst_222 = arith.constant dense<0.000000e+00> : vector<8xf32>
    %310 = vector.multi_reduction <add>, %309, %cst_222 [1] : vector<8x16xf32> to vector<8xf32>
    %311 = vector.shape_cast %310 : vector<8xf32> to vector<8x1xf32>
    %312 = vector.broadcast %311 : vector<8x1xf32> to vector<8x16xf32>
    %313 = arith.divf %309, %312 : vector<8x16xf32>
    %cst_223 = arith.constant dense<0.000000e+00> : vector<8x8xf32>
    %314 = tpu.matmul %313, %300, %cst_223 {dimension_numbers = #tpu.dot_dimension_numbers<[1], [0], [0], [1], [0, 0, 1, 1], [], []>} : vector<8x16xf32>, vector<16x8xf32>, vector<8x8xf32> -> vector<8x8xf32>
    %c6_224 = arith.constant 6 : index
    %c0_225 = arith.constant 0 : index
    %c0_226 = arith.constant 0 : index
    %315 = vector.load %arg9[%c6_224, %c0_225, %c0_226] : memref<8x8x32xf32, #tpu.memory_space<vmem>>, vector<1x8x32xf32>
    %316 = vector.shape_cast %315 : vector<1x8x32xf32> to vector<8x32xf32>
    %cst_227 = arith.constant dense<0.000000e+00> : vector<8x32xf32>
    %317 = tpu.matmul %314, %316, %cst_227 {dimension_numbers = #tpu.dot_dimension_numbers<[1], [0], [0], [1], [0, 0, 1, 1], [], []>} : vector<8x8xf32>, vector<8x32xf32>, vector<8x32xf32> -> vector<8x32xf32>
    %318 = arith.addf %279, %317 : vector<8x32xf32>
    %c7 = arith.constant 7 : index
    %c0_228 = arith.constant 0 : index
    %c0_229 = arith.constant 0 : index
    %319 = vector.load %arg3[%c7, %c0_228, %c0_229] : memref<8x32x8xf32, #tpu.memory_space<vmem>>, vector<1x32x8xf32>
    %320 = vector.shape_cast %319 : vector<1x32x8xf32> to vector<32x8xf32>
    %cst_230 = arith.constant dense<0.000000e+00> : vector<8x8xf32>
    %321 = tpu.matmul %200, %320, %cst_230 {dimension_numbers = #tpu.dot_dimension_numbers<[1], [0], [0], [1], [0, 0, 1, 1], [], []>} : vector<8x32xf32>, vector<32x8xf32>, vector<8x8xf32> -> vector<8x8xf32>
    %c7_231 = arith.constant 7 : index
    %c0_232 = arith.constant 0 : index
    %c0_233 = arith.constant 0 : index
    %322 = vector.load %arg4[%c7_231, %c0_232, %c0_233] : memref<8x1x8xf32, #tpu.memory_space<vmem>>, vector<1x1x8xf32>
    %323 = vector.shape_cast %322 : vector<1x1x8xf32> to vector<1x8xf32>
    %324 = vector.broadcast %323 : vector<1x8xf32> to vector<8x8xf32>
    %325 = arith.addf %321, %324 : vector<8x8xf32>
    %c7_234 = arith.constant 7 : index
    %c0_235 = arith.constant 0 : index
    %c0_236 = arith.constant 0 : index
    %326 = vector.load %arg5[%c7_234, %c0_235, %c0_236] : memref<8x32x8xf32, #tpu.memory_space<vmem>>, vector<1x32x8xf32>
    %327 = vector.shape_cast %326 : vector<1x32x8xf32> to vector<32x8xf32>
    %cst_237 = arith.constant dense<0.000000e+00> : vector<16x8xf32>
    %328 = tpu.matmul %3, %327, %cst_237 {dimension_numbers = #tpu.dot_dimension_numbers<[1], [0], [0], [1], [0, 0, 1, 1], [], []>} : vector<16x32xf32>, vector<32x8xf32>, vector<16x8xf32> -> vector<16x8xf32>
    %c7_238 = arith.constant 7 : index
    %c0_239 = arith.constant 0 : index
    %c0_240 = arith.constant 0 : index
    %329 = vector.load %arg6[%c7_238, %c0_239, %c0_240] : memref<8x1x8xf32, #tpu.memory_space<vmem>>, vector<1x1x8xf32>
    %330 = vector.shape_cast %329 : vector<1x1x8xf32> to vector<1x8xf32>
    %331 = vector.broadcast %330 : vector<1x8xf32> to vector<16x8xf32>
    %332 = arith.addf %328, %331 : vector<16x8xf32>
    %c7_241 = arith.constant 7 : index
    %c0_242 = arith.constant 0 : index
    %c0_243 = arith.constant 0 : index
    %333 = vector.load %arg7[%c7_241, %c0_242, %c0_243] : memref<8x32x8xf32, #tpu.memory_space<vmem>>, vector<1x32x8xf32>
    %334 = vector.shape_cast %333 : vector<1x32x8xf32> to vector<32x8xf32>
    %cst_244 = arith.constant dense<0.000000e+00> : vector<16x8xf32>
    %335 = tpu.matmul %3, %334, %cst_244 {dimension_numbers = #tpu.dot_dimension_numbers<[1], [0], [0], [1], [0, 0, 1, 1], [], []>} : vector<16x32xf32>, vector<32x8xf32>, vector<16x8xf32> -> vector<16x8xf32>
    %c7_245 = arith.constant 7 : index
    %c0_246 = arith.constant 0 : index
    %c0_247 = arith.constant 0 : index
    %336 = vector.load %arg8[%c7_245, %c0_246, %c0_247] : memref<8x1x8xf32, #tpu.memory_space<vmem>>, vector<1x1x8xf32>
    %337 = vector.shape_cast %336 : vector<1x1x8xf32> to vector<1x8xf32>
    %338 = vector.broadcast %337 : vector<1x8xf32> to vector<16x8xf32>
    %339 = arith.addf %335, %338 : vector<16x8xf32>
    %340 = tpu.transpose %332, [1, 0] : vector<16x8xf32> -> vector<8x16xf32>
    %cst_248 = arith.constant dense<0.000000e+00> : vector<8x16xf32>
    %341 = tpu.matmul %325, %340, %cst_248 {dimension_numbers = #tpu.dot_dimension_numbers<[1], [0], [0], [1], [0, 0, 1, 1], [], []>} : vector<8x8xf32>, vector<8x16xf32>, vector<8x16xf32> -> vector<8x16xf32>
    %cst_249 = arith.constant 0.353553385 : f32
    %342 = vector.broadcast %cst_249 : f32 to vector<8x16xf32>
    %343 = arith.mulf %341, %342 : vector<8x16xf32>
    %cst_250 = arith.constant dense<0xFF800000> : vector<8xf32>
    %344 = vector.multi_reduction <maximumf>, %343, %cst_250 [1] : vector<8x16xf32> to vector<8xf32>
    %345 = vector.shape_cast %344 : vector<8xf32> to vector<8x1xf32>
    %346 = vector.broadcast %345 : vector<8x1xf32> to vector<8x16xf32>
    %347 = arith.subf %343, %346 : vector<8x16xf32>
    %348 = math.exp %347 : vector<8x16xf32>
    %cst_251 = arith.constant dense<0.000000e+00> : vector<8xf32>
    %349 = vector.multi_reduction <add>, %348, %cst_251 [1] : vector<8x16xf32> to vector<8xf32>
    %350 = vector.shape_cast %349 : vector<8xf32> to vector<8x1xf32>
    %351 = vector.broadcast %350 : vector<8x1xf32> to vector<8x16xf32>
    %352 = arith.divf %348, %351 : vector<8x16xf32>
    %cst_252 = arith.constant dense<0.000000e+00> : vector<8x8xf32>
    %353 = tpu.matmul %352, %339, %cst_252 {dimension_numbers = #tpu.dot_dimension_numbers<[1], [0], [0], [1], [0, 0, 1, 1], [], []>} : vector<8x16xf32>, vector<16x8xf32>, vector<8x8xf32> -> vector<8x8xf32>
    %c7_253 = arith.constant 7 : index
    %c0_254 = arith.constant 0 : index
    %c0_255 = arith.constant 0 : index
    %354 = vector.load %arg9[%c7_253, %c0_254, %c0_255] : memref<8x8x32xf32, #tpu.memory_space<vmem>>, vector<1x8x32xf32>
    %355 = vector.shape_cast %354 : vector<1x8x32xf32> to vector<8x32xf32>
    %cst_256 = arith.constant dense<0.000000e+00> : vector<8x32xf32>
    %356 = tpu.matmul %353, %355, %cst_256 {dimension_numbers = #tpu.dot_dimension_numbers<[1], [0], [0], [1], [0, 0, 1, 1], [], []>} : vector<8x8xf32>, vector<8x32xf32>, vector<8x32xf32> -> vector<8x32xf32>
    %357 = arith.addf %318, %356 : vector<8x32xf32>
    %c1_257 = arith.constant 1 : index
    %c0_258 = arith.constant 0 : index
    %c0_259 = arith.constant 0 : index
    %358 = vector.load %arg10[%c1_257, %c0_258, %c0_259] : memref<2x1x32xf32, #tpu.memory_space<vmem>>, vector<1x1x32xf32>
    %359 = vector.shape_cast %358 : vector<1x1x32xf32> to vector<1x32xf32>
    %360 = vector.broadcast %359 : vector<1x32xf32> to vector<8x32xf32>
    %361 = arith.addf %357, %360 : vector<8x32xf32>
    %362 = arith.addf %200, %361 : vector<8x32xf32>
    %c1_260 = arith.constant 1 : index
    %c0_261 = arith.constant 0 : index
    %c0_262 = arith.constant 0 : index
    %363 = vector.load %arg11[%c1_260, %c0_261, %c0_262] : memref<3x1x32xf32, #tpu.memory_space<vmem>>, vector<1x1x32xf32>
    %364 = vector.shape_cast %363 : vector<1x1x32xf32> to vector<1x32xf32>
    %c1_263 = arith.constant 1 : index
    %c0_264 = arith.constant 0 : index
    %c0_265 = arith.constant 0 : index
    %365 = vector.load %arg12[%c1_263, %c0_264, %c0_265] : memref<3x1x32xf32, #tpu.memory_space<vmem>>, vector<1x1x32xf32>
    %366 = vector.shape_cast %365 : vector<1x1x32xf32> to vector<1x32xf32>
    %cst_266 = arith.constant dense<0.000000e+00> : vector<8xf32>
    %367 = vector.multi_reduction <add>, %362, %cst_266 [1] : vector<8x32xf32> to vector<8xf32>
    %368 = vector.shape_cast %367 : vector<8xf32> to vector<8x1xf32>
    %cst_267 = arith.constant 3.200000e+01 : f32
    %369 = vector.broadcast %cst_267 : f32 to vector<8x1xf32>
    %370 = arith.divf %368, %369 : vector<8x1xf32>
    %371 = vector.broadcast %370 : vector<8x1xf32> to vector<8x32xf32>
    %372 = arith.subf %362, %371 : vector<8x32xf32>
    %373 = arith.mulf %372, %372 : vector<8x32xf32>
    %cst_268 = arith.constant dense<0.000000e+00> : vector<8xf32>
    %374 = vector.multi_reduction <add>, %373, %cst_268 [1] : vector<8x32xf32> to vector<8xf32>
    %375 = vector.shape_cast %374 : vector<8xf32> to vector<8x1xf32>
    %cst_269 = arith.constant 3.200000e+01 : f32
    %376 = vector.broadcast %cst_269 : f32 to vector<8x1xf32>
    %377 = arith.divf %375, %376 : vector<8x1xf32>
    %cst_270 = arith.constant 9.99999974E-6 : f32
    %378 = vector.broadcast %cst_270 : f32 to vector<8x1xf32>
    %379 = arith.addf %377, %378 : vector<8x1xf32>
    %380 = math.rsqrt %379 : vector<8x1xf32>
    %381 = vector.broadcast %380 : vector<8x1xf32> to vector<8x32xf32>
    %382 = arith.mulf %372, %381 : vector<8x32xf32>
    %383 = vector.broadcast %364 : vector<1x32xf32> to vector<8x32xf32>
    %384 = arith.mulf %382, %383 : vector<8x32xf32>
    %385 = vector.broadcast %366 : vector<1x32xf32> to vector<8x32xf32>
    %386 = arith.addf %384, %385 : vector<8x32xf32>
    %c0_271 = arith.constant 0 : index
    %c0_272 = arith.constant 0 : index
    %387 = vector.load %arg13[%c0_271, %c0_272] : memref<32x64xf32, #tpu.memory_space<vmem>>, vector<32x64xf32>
    %cst_273 = arith.constant dense<0.000000e+00> : vector<8x64xf32>
    %388 = tpu.matmul %386, %387, %cst_273 {dimension_numbers = #tpu.dot_dimension_numbers<[1], [0], [0], [1], [0, 0, 1, 1], [], []>} : vector<8x32xf32>, vector<32x64xf32>, vector<8x64xf32> -> vector<8x64xf32>
    %c0_274 = arith.constant 0 : index
    %c0_275 = arith.constant 0 : index
    %389 = vector.load %arg14[%c0_274, %c0_275] : memref<1x64xf32, #tpu.memory_space<vmem>>, vector<1x64xf32>
    %390 = vector.broadcast %389 : vector<1x64xf32> to vector<8x64xf32>
    %391 = arith.addf %388, %390 : vector<8x64xf32>
    %cst_276 = arith.constant 0.000000e+00 : f32
    %392 = vector.broadcast %cst_276 : f32 to vector<8x64xf32>
    %393 = arith.maximumf %391, %392 : vector<8x64xf32>
    %c0_277 = arith.constant 0 : index
    %c0_278 = arith.constant 0 : index
    %394 = vector.load %arg15[%c0_277, %c0_278] : memref<64x32xf32, #tpu.memory_space<vmem>>, vector<64x32xf32>
    %cst_279 = arith.constant dense<0.000000e+00> : vector<8x32xf32>
    %395 = tpu.matmul %393, %394, %cst_279 {dimension_numbers = #tpu.dot_dimension_numbers<[1], [0], [0], [1], [0, 0, 1, 1], [], []>} : vector<8x64xf32>, vector<64x32xf32>, vector<8x32xf32> -> vector<8x32xf32>
    %c0_280 = arith.constant 0 : index
    %c0_281 = arith.constant 0 : index
    %396 = vector.load %arg16[%c0_280, %c0_281] : memref<1x32xf32, #tpu.memory_space<vmem>>, vector<1x32xf32>
    %397 = vector.broadcast %396 : vector<1x32xf32> to vector<8x32xf32>
    %398 = arith.addf %395, %397 : vector<8x32xf32>
    %399 = arith.addf %386, %398 : vector<8x32xf32>
    %c2_282 = arith.constant 2 : index
    %c0_283 = arith.constant 0 : index
    %c0_284 = arith.constant 0 : index
    %400 = vector.load %arg11[%c2_282, %c0_283, %c0_284] : memref<3x1x32xf32, #tpu.memory_space<vmem>>, vector<1x1x32xf32>
    %401 = vector.shape_cast %400 : vector<1x1x32xf32> to vector<1x32xf32>
    %c2_285 = arith.constant 2 : index
    %c0_286 = arith.constant 0 : index
    %c0_287 = arith.constant 0 : index
    %402 = vector.load %arg12[%c2_285, %c0_286, %c0_287] : memref<3x1x32xf32, #tpu.memory_space<vmem>>, vector<1x1x32xf32>
    %403 = vector.shape_cast %402 : vector<1x1x32xf32> to vector<1x32xf32>
    %cst_288 = arith.constant dense<0.000000e+00> : vector<8xf32>
    %404 = vector.multi_reduction <add>, %399, %cst_288 [1] : vector<8x32xf32> to vector<8xf32>
    %405 = vector.shape_cast %404 : vector<8xf32> to vector<8x1xf32>
    %cst_289 = arith.constant 3.200000e+01 : f32
    %406 = vector.broadcast %cst_289 : f32 to vector<8x1xf32>
    %407 = arith.divf %405, %406 : vector<8x1xf32>
    %408 = vector.broadcast %407 : vector<8x1xf32> to vector<8x32xf32>
    %409 = arith.subf %399, %408 : vector<8x32xf32>
    %410 = arith.mulf %409, %409 : vector<8x32xf32>
    %cst_290 = arith.constant dense<0.000000e+00> : vector<8xf32>
    %411 = vector.multi_reduction <add>, %410, %cst_290 [1] : vector<8x32xf32> to vector<8xf32>
    %412 = vector.shape_cast %411 : vector<8xf32> to vector<8x1xf32>
    %cst_291 = arith.constant 3.200000e+01 : f32
    %413 = vector.broadcast %cst_291 : f32 to vector<8x1xf32>
    %414 = arith.divf %412, %413 : vector<8x1xf32>
    %cst_292 = arith.constant 9.99999974E-6 : f32
    %415 = vector.broadcast %cst_292 : f32 to vector<8x1xf32>
    %416 = arith.addf %414, %415 : vector<8x1xf32>
    %417 = math.rsqrt %416 : vector<8x1xf32>
    %418 = vector.broadcast %417 : vector<8x1xf32> to vector<8x32xf32>
    %419 = arith.mulf %409, %418 : vector<8x32xf32>
    %420 = vector.broadcast %401 : vector<1x32xf32> to vector<8x32xf32>
    %421 = arith.mulf %419, %420 : vector<8x32xf32>
    %422 = vector.broadcast %403 : vector<1x32xf32> to vector<8x32xf32>
    %423 = arith.addf %421, %422 : vector<8x32xf32>
    %c0_293 = arith.constant 0 : index
    %c0_294 = arith.constant 0 : index
    %c0_295 = arith.constant 0 : index
    %424 = vector.load %arg17[%c0_293, %c0_294, %c0_295] : memref<1x8x32xf32, #tpu.memory_space<vmem>>, vector<1x8x32xf32>
    %425 = vector.shape_cast %424 : vector<1x8x32xf32> to vector<8x32xf32>
    %426 = vector.shape_cast %423 : vector<8x32xf32> to vector<1x8x32xf32>
    tpu.vector_store %arg17[%c0_293, %c0_294, %c0_295], %426 {strides = array<i32>} : memref<1x8x32xf32, #tpu.memory_space<vmem>>, vector<1x8x32xf32>,
    return
  }
  func.func @transform_0(%arg0: i32) -> (i32, i32, i32) {
    %c0_i32 = arith.constant 0 : i32
    %c0_i32_0 = arith.constant 0 : i32
    %c0_i32_1 = arith.constant 0 : i32
    return %arg0, %c0_i32, %c0_i32_0 : i32, i32, i32
  }
  func.func @transform_1(%arg0: i32) -> (i32, i32, i32) {
    %c0_i32 = arith.constant 0 : i32
    %c0_i32_0 = arith.constant 0 : i32
    %c0_i32_1 = arith.constant 0 : i32
    return %arg0, %c0_i32, %c0_i32_0 : i32, i32, i32
  }
  func.func @transform_2(%arg0: i32) -> (i32, i32, i32) {
    %c0_i32 = arith.constant 0 : i32
    %c0_i32_0 = arith.constant 0 : i32
    %c0_i32_1 = arith.constant 0 : i32
    %c0_i32_2 = arith.constant 0 : i32
    return %c0_i32, %c0_i32_0, %c0_i32_1 : i32, i32, i32
  }
  func.func @transform_3(%arg0: i32) -> (i32, i32, i32) {
    %c0_i32 = arith.constant 0 : i32
    %c0_i32_0 = arith.constant 0 : i32
    %c0_i32_1 = arith.constant 0 : i32
    %c0_i32_2 = arith.constant 0 : i32
    return %c0_i32, %c0_i32_0, %c0_i32_1 : i32, i32, i32
  }
  func.func @transform_4(%arg0: i32) -> (i32, i32, i32) {
    %c0_i32 = arith.constant 0 : i32
    %c0_i32_0 = arith.constant 0 : i32
    %c0_i32_1 = arith.constant 0 : i32
    %c0_i32_2 = arith.constant 0 : i32
    return %c0_i32, %c0_i32_0, %c0_i32_1 : i32, i32, i32
  }
  func.func @transform_5(%arg0: i32) -> (i32, i32, i32) {
    %c0_i32 = arith.constant 0 : i32
    %c0_i32_0 = arith.constant 0 : i32
    %c0_i32_1 = arith.constant 0 : i32
    %c0_i32_2 = arith.constant 0 : i32
    return %c0_i32, %c0_i32_0, %c0_i32_1 : i32, i32, i32
  }
  func.func @transform_6(%arg0: i32) -> (i32, i32, i32) {
    %c0_i32 = arith.constant 0 : i32
    %c0_i32_0 = arith.constant 0 : i32
    %c0_i32_1 = arith.constant 0 : i32
    %c0_i32_2 = arith.constant 0 : i32
    return %c0_i32, %c0_i32_0, %c0_i32_1 : i32, i32, i32
  }
  func.func @transform_7(%arg0: i32) -> (i32, i32, i32) {
    %c0_i32 = arith.constant 0 : i32
    %c0_i32_0 = arith.constant 0 : i32
    %c0_i32_1 = arith.constant 0 : i32
    %c0_i32_2 = arith.constant 0 : i32
    return %c0_i32, %c0_i32_0, %c0_i32_1 : i32, i32, i32
  }
  func.func @transform_8(%arg0: i32) -> (i32, i32, i32) {
    %c0_i32 = arith.constant 0 : i32
    %c0_i32_0 = arith.constant 0 : i32
    %c0_i32_1 = arith.constant 0 : i32
    %c0_i32_2 = arith.constant 0 : i32
    return %c0_i32, %c0_i32_0, %c0_i32_1 : i32, i32, i32
  }
  func.func @transform_9(%arg0: i32) -> (i32, i32, i32) {
    %c0_i32 = arith.constant 0 : i32
    %c0_i32_0 = arith.constant 0 : i32
    %c0_i32_1 = arith.constant 0 : i32
    %c0_i32_2 = arith.constant 0 : i32
    return %c0_i32, %c0_i32_0, %c0_i32_1 : i32, i32, i32
  }
  func.func @transform_10(%arg0: i32) -> (i32, i32, i32) {
    %c0_i32 = arith.constant 0 : i32
    %c0_i32_0 = arith.constant 0 : i32
    %c0_i32_1 = arith.constant 0 : i32
    %c0_i32_2 = arith.constant 0 : i32
    return %c0_i32, %c0_i32_0, %c0_i32_1 : i32, i32, i32
  }
  func.func @transform_11(%arg0: i32) -> (i32, i32, i32) {
    %c0_i32 = arith.constant 0 : i32
    %c0_i32_0 = arith.constant 0 : i32
    %c0_i32_1 = arith.constant 0 : i32
    %c0_i32_2 = arith.constant 0 : i32
    return %c0_i32, %c0_i32_0, %c0_i32_1 : i32, i32, i32
  }
  func.func @transform_12(%arg0: i32) -> (i32, i32) {
    %c0_i32 = arith.constant 0 : i32
    %c0_i32_0 = arith.constant 0 : i32
    %c0_i32_1 = arith.constant 0 : i32
    return %c0_i32, %c0_i32_0 : i32, i32
  }
  func.func @transform_13(%arg0: i32) -> (i32, i32) {
    %c0_i32 = arith.constant 0 : i32
    %c0_i32_0 = arith.constant 0 : i32
    %c0_i32_1 = arith.constant 0 : i32
    return %c0_i32, %c0_i32_0 : i32, i32
  }
  func.func @transform_14(%arg0: i32) -> (i32, i32) {
    %c0_i32 = arith.constant 0 : i32
    %c0_i32_0 = arith.constant 0 : i32
    %c0_i32_1 = arith.constant 0 : i32
    return %c0_i32, %c0_i32_0 : i32, i32
  }
  func.func @transform_15(%arg0: i32) -> (i32, i32) {
    %c0_i32 = arith.constant 0 : i32
    %c0_i32_0 = arith.constant 0 : i32
    %c0_i32_1 = arith.constant 0 : i32
    return %c0_i32, %c0_i32_0 : i32, i32
  }
  func.func @transform_16(%arg0: i32) -> (i32, i32, i32) {
    %c0_i32 = arith.constant 0 : i32
    %c0_i32_0 = arith.constant 0 : i32
    %c0_i32_1 = arith.constant 0 : i32
    return %arg0, %c0_i32, %c0_i32_0 : i32, i32, i32
  }
}

</mosaic_0001>

<bundles_post_ra>
// kernel: decoder_forward.5
= control target key start
LH: loop header
LB: loop body
LE: loop exit
PB: predicated region body
PF: predicated region fallthrough
CT: control target
= control target key end

     0   :  { %8 = vsyncpa [#allocation3], 0  ;;  %s504_s0 = inlined_call_operand.vmem [shape: f32[2,8,32], index: 0, kind: input, shape index: {}]   ;;  %s505_s1 = inlined_call_operand.vmem [shape: f32[1,32], index: 1, kind: input, shape index: {}]   ;;  %s506_s2 = inlined_call_operand.vmem [shape: f32[1,32], index: 2, kind: input, shape index: {}]   ;;  %s507_s3 = inlined_call_operand.hbm [shape: f32[2,8,32], index: 3, kind: output, shape index: {}]  }
   0x1   :  { %10 = vsyncpa [#allocation3 + $0x1], 0  ;;  %s408_s12 = smov 0   ;;  %s410_s13 = smov 0  }
   0x2   :  { %s412_s14 = smov 0   ;;  %s414_s15 = smov 0  }
   0x3 LB: > { %s429_s16 = sadd.s32 4294967295, %s385_s15   ;;  %s272_s17 = sadd.s32 4294967294, %s385_s15   ;;  %s385_s15 = sphi %s414_s15, %s513_s15   ;;  %s381_s14 = sphi %s412_s14, %s512_s14   ;;  %s377_s13 = sphi %s410_s13, %s511_s13   ;;  %s373_s12 = sphi %s408_s12, %s510_s12  }
   0x4   : > { %s433_s18 = sadd.s32 1, %s385_s15   ;;  %s91_s19 = sadd.s32 1, %s381_s14 }
   0x5   : > { %s88_s20 = ssub.s32 %s385_s15, %s433_s18  ;;  %p101_p0 = scmp.ne.s32.totalorder %s381_s14, %s377_s13 }
   0x6   : > { %p89_p1 = scmp.eq.s32.totalorder %s88_s20, 0  ;;  %p102_p2 = scmp.eq.s32.totalorder %s429_s16, 1 }
   0x7   : > { %p107_p3 = scmp.ne.s32.totalorder %s377_s13, %s373_s12  ;;  %p108_p4 = scmp.eq.s32.totalorder %s272_s17, 1 }
   0x8   : > { %s444_s21 = scalar_select %p89_p1, %s381_s14, %s91_s19  }
   0x9   : > { %p446_p5 = por %p102_p2, %p101_p0  ;;  %p450_p6 = por %p108_p4, %p107_p3 }
   0xa   : > { %p275_p7 = scmp.ge.s32.totalorder %s385_s15, 1  ;;  %p139_p8 = scmp.lt.s32.totalorder %s385_s15, 3 }
   0xc   : > { %p140_p9 = pnand %p275_p7, %p139_p8 }
   0xd   : > { %p162_p10 = scmp.lt.s32.totalorder (!%p140_p9), %s429_s16, 1  ;;  %s159_s29 = sand.u32 (!%p140_p9), 1, %s377_s13  }
   0xe   : > { %143 = sbr.rel (%p140_p9) target bundleno = 345 (0x159), region = 32  ;;  %s276_s30 = sshll.u32 (!%p140_p9), %s159_s29, 3 }
   0xf   : > { %s281_s8 = sshll.u32 (!%p140_p9), %s429_s16, 7  ;;  %s161_s9 = scalar_lea.vmem (!%p140_p9), [#allocation2], %s276_s30 }
  0x10   : > { %s213_s10 = sshll.u32 (!%p140_p9), %s161_s9, 4  ;;  %s211_s19 = scalar_lea.hbm (!%p140_p9), %s507_s3, %s281_s8  ;;  %s214_s10 = int_to_ptr.vmem [resolvable:$true] %s213_s10 }
  0x11   : > { %s200_s20 = scalar_lea.sflag (!%p140_p9), [#allocation3], %s159_s29 }
  0x13   : > { %s163_s24 = scalar_select %p162_p10, %s429_s16, 1  ;;  %vm169_vm0 = vcmask 261120   ;;  %v278_v11 = vld [vmem:[%s505_s1] ss:$0 sm:$0xff] }
  0x14   : > { %v279_v13 = vld [vmem:[%s506_s2] ss:$0 sm:$0xff] }
  0x15   : > { %s277_s25 = sshll.u32 %s163_s24, 3  ;;  %s325_s24 = scalar_lea.vmem %s214_s10, 128 }
  0x16   : > { %s165_s28 = scalar_lea.vmem %s504_s0, %s277_s25  ;;  %p326_p11 = scmp.ne.s32.totalorder %s214_s10, %s325_s24 }
  0x17   : > { %v166_v0 = vld [vmem:[%s165_s28] sm:$0xff]  ;;  %s387_s25 = smov [#allocation2]  }
  0x18   : > { %v170_v1 = vsel %vm169_vm0, %v166_v0, 0.0  ;;  %p327_p12 = pnand %p326_p11, %p446_p5  ;;  %s329_s26 = sshll.u32 %s387_s25, 4  ;;  %s330_s26 = int_to_ptr.vmem [resolvable:$false] %s329_s26 }
  0x19   : > { %171 = vadd.xlane.f32.xlu0 %v170_v1  ;;  %s331_s16 = scalar_lea.vmem %s330_s26, 256  ;;  %p332_p0 = scmp.lt.s32.totalorder %s214_s10, %s330_s26 }
  0x1a   : > { %p328_p13 = pneg %p327_p12  ;;  %p333_p1 = scmp.lt.s32.totalorder %s331_s16, %s325_s24 }
  0x1c   : > { %p334_p2 = por %p333_p1, %p332_p0 }
  0x1e   : > { %p335_p3 = pnand %p334_p2, %p328_p13 }
  0xa2   : > { %v172_v2 = vpop.xlane.xlu0 %171 }
  0xa3   : > { %v174_v3 = vmul.f32 0.03125, %v172_v2 }
  0xa5   : > { %v175_v4 = vsub.f32 %v166_v0, %v174_v3 }
  0xa7   : > { %v176_v5 = vmul.f32 %v175_v4, %v175_v4 }
  0xa9   : > { %v177_v6 = vsel %vm169_vm0, %v176_v5, 0.0 }
  0xaa   : > { %178 = vadd.xlane.f32.xlu0 %v177_v6 }
 0x133   : > { %v179_v7 = vpop.xlane.xlu0 %178 }
 0x134   : > { %v180_v8 = vmul.f32 0.03125, %v179_v7 }
 0x136   : > { %v181_v9 = vadd.f32 1e-05, %v180_v8 }
 0x138   : > { %323 = vrsqrt.f32 %v181_v9 }
 0x145   : > { %v324_v10 = vpop.eup %323 }
 0x146   : > { %v183_v12 = vmul.f32 %v324_v10, %v175_v4 }
 0x148   : > { %v190_v14 = vmul.f32 %v278_v11, %v183_v12 }
 0x14a   : > { %v197_v15 = vadd.f32 %v279_v13, %v190_v14 }
 0x14c   : > { %198 = vst.msk [vmem:[%s161_s9] sm:$0xff] %vm169_vm0, %v197_v15 }
 0x14d   : > { %338 = shalt.err (!%p335_p3)
}
 0x14e   : > { %s339_s27 = scalar_lea.hbm %s211_s19, 128  ;;  %s343_s30 = scalar_lea.hbm %s507_s3, 256 }
 0x14f   : > { %p340_p4 = scmp.ne.s32.totalorder %s211_s19, %s339_s27  ;;  %p344_p9 = scmp.lt.s32.totalorder %s211_s19, %s507_s3 }
 0x150   : > { %p345_p10 = scmp.lt.s32.totalorder %s343_s30, %s339_s27 }
 0x151   : > { %p341_p7 = pnand %p340_p4, %p446_p5 }
 0x152   : > { %p346_p11 = por %p345_p10, %p344_p9 }
 0x153   : > { %p342_p8 = pneg %p341_p7 }
 0x155   : > { %p347_p12 = pnand %p346_p11, %p342_p8 }
 0x157   : > { %350 = shalt.err (!%p347_p12)
}
 0x158   : > { %284 = dma.vmem_to_hbm [thread:$0]  (%p446_p5), %s214_s10, 128, %s211_s19, %s200_s20  }
 0x159 PF: > { %p290_p13 = scmp.ge.s32.totalorder %s385_s15, 2  ;;  %s225_s6 = sand.u32 1, %s373_s12  }
 0x15a   : > { %s226_s7 = scalar_lea.sflag [#allocation3], %s225_s6 }
 0x15b   : > { %p287_p0 = pnand %p290_p13, %p450_p6 }
 0x15d   : > { %p288_p1 = pneg %p287_p0 }
 0x15f   : > { %368 = dma.done.wait (%p288_p1), %s226_s7, 128  }
 0x160   : > { %370 = vsyncadd (%p288_p1), %s226_s7, 4294967168  ;;  %p13_p2 = scmp.ge.s32.totalorder %s433_s18, 4   ;;  %s510_s12 = smov %s377_s13 }
 0x161   : > { %s511_s13 = smov %s381_s14  ;;  %s512_s14 = smov %s444_s21 }
 0x162   : > { %s513_s15 = smov %s433_s18  ;;  %15 = sbr.rel (!%p13_p2) target bundleno = 3 (0x3), region = 67 }
 0x167   :  { %231 = vsyncpa [#allocation3], 1 }
 0x168   :  { %233 = vsyncpa [#allocation3 + $0x1], 1 }

// kernel: decoder_forward.3
= control target key start
LH: loop header
LB: loop body
LE: loop exit
PB: predicated region body
PF: predicated region fallthrough
CT: control target
= control target key end

     0   :  { %s5849_s21 = smov 0   ;;  %s6689_s0 = inlined_call_operand.vmem [shape: f32[2,8,32], index: 0, kind: input, shape index: {}]   ;;  %s6690_s1 = inlined_call_operand.vmem [shape: f32[2,16,32], index: 1, kind: input, shape index: {}]   ;;  %s6691_s2 = inlined_call_operand.vmem [shape: f32[8,32,8], index: 2, kind: input, shape index: {}]   ;;  %s6692_s3 = inlined_call_operand.vmem [shape: f32[8,1,8], index: 3, kind: input, shape index: {}]   ;;  %s6693_s4 = inlined_call_operand.vmem [shape: f32[8,32,8], index: 4, kind: input, shape index: {}]   ;;  %s6694_s5 = inlined_call_operand.vmem [shape: f32[8,1,8], index: 5, kind: input, shape index: {}]   ;;  %s6695_s6 = inlined_call_operand.vmem [shape: f32[8,32,8], index: 6, kind: input, shape index: {}]   ;;  %s6696_s7 = inlined_call_operand.vmem [shape: f32[8,1,8], index: 7, kind: input, shape index: {}]   ;;  %s6697_s8 = inlined_call_operand.vmem [shape: f32[8,8,32], index: 8, kind: input, shape index: {}]   ;;  %s6698_s9 = inlined_call_operand.vmem [shape: f32[2,1,32], index: 9, kind: input, shape index: {}]   ;;  %s6699_s10 = inlined_call_operand.vmem [shape: f32[3,1,32], index: 10, kind: input, shape index: {}]   ;;  %s6700_s11 = inlined_call_operand.vmem [shape: f32[3,1,32], index: 11, kind: input, shape index: {}]   ;;  %s6701_s12 = inlined_call_operand.vmem [shape: f32[32,64], index: 12, kind: input, shape index: {}]   ;;  %s6702_s13 = inlined_call_operand.vmem [shape: f32[1,64], index: 13, kind: input, shape index: {}]   ;;  %s6703_s14 = inlined_call_operand.vmem [shape: f32[64,32], index: 14, kind: input, shape index: {}]   ;;  %s6704_s15 = inlined_call_operand.vmem [shape: f32[1,32], index: 15, kind: input, shape index: {}]   ;;  %s6705_s16 = inlined_call_operand.vmem [shape: f32[2,8,32], index: 16, kind: output, shape index: {}]  }
   0x1   :  { %6706 = sst [smem:[#allocation2_spill]] %s6689_s0 }
   0x2 LB: > { %s4845_s22 = sadd.s32 4294967295, %s5760_s21   ;;  %p4849_p0 = scmp.ge.s32.totalorder %s5760_s21, 1  ;;  %s5760_s21 = sphi %s5849_s21, %s26_s21  }
   0x3   : > { %p471_p1 = scmp.lt.s32.totalorder %s5760_s21, 3 }
   0x5   : > { %p472_p2 = pnand %p4849_p0, %p471_p1 }
   0x6   : > { %p524_p3 = scmp.lt.s32.totalorder (!%p472_p2), %s4845_s22, 1  ;;  %s6707_s27 = sld [smem:[#allocation2_spill]] (!%p472_p2) }
   0x7   : > { %475 = sbr.rel (%p472_p2) target bundleno = 8588 (0x218c), region = 84 }
   0xc   : > { %v633_v0 = vld [vmem:[%s6693_s4 + $0x18] sm:$0xff]  ;;  %v5762_v2 = vmov 0.0   ;;  %v632_v3 = vld [vmem:[%s6693_s4 + $0x10] sm:$0xff]  ;;  %s6709_s22 = smov (!%p524_p3, %s4845_s22), 1  ;;  %v631_v5 = vld [vmem:[%s6693_s4 + $0x8] sm:$0xff]  ;;  %vm556_vm0 = vcmask 261120   ;;  %v540_v26 = vlaneseq }
   0xd   : > { %v548_v1 = vld [vmem:[%s6691_s2 + $0x18] sm:$0xff]  ;;  %5287 = vmatprep.subr.mxu1 %v5762_v2  ;;  %5276 = vmatprep.subr.mxu0 %v5762_v2  ;;  %v547_v4 = vld [vmem:[%s6691_s2 + $0x10] sm:$0xff]  ;;  %v546_v6 = vld [vmem:[%s6691_s2 + $0x8] sm:$0xff]  ;;  %s4850_s20 = sshll.u32 %s6709_s22, 3  ;;  %vm5763_vm1 = vmmov 0   ;;  %vm792_vm2 = vcmask 64512  }
   0xe   : > { %5288 = vmatpush3.msra.mxu1 %v633_v0  ;;  %5277 = vmatpush3.msra.mxu0 %v548_v1  ;;  %v630_v7 = vld [vmem:[%s6693_s4] sm:$0xff]  ;;  %s527_s28 = scalar_lea.vmem %s6707_s27, %s4850_s20  ;;  %v714_v10 = vld [vmem:[%s6695_s6 + $0x18] sm:$0xff]  ;;  %v713_v11 = vld [vmem:[%s6695_s6 + $0x10] sm:$0xff]  ;;  %v5948_v27 = vshrl.u32 %v540_v26, 7  ;;  %v5950_v28 = vand.u32 127, %v540_v26  ;;  %s5077_s0 = sshll.u32 %s6709_s22, 4 }
   0xf   : > { %5289 = vmatprep.subr.mxu1 %v5762_v2  ;;  %5278 = vmatprep.subr.mxu0 %v5762_v2  ;;  %v545_v8 = vld [vmem:[%s6691_s2] sm:$0xff]  ;;  %v712_v12 = vld [vmem:[%s6695_s6 + $0x8] sm:$0xff]  ;;  %v4866_v39 = vld [vmem:[%s6691_s2 + $0x38] sm:$0xff]  ;;  %s532_s24 = scalar_lea.vmem %s6690_s1, %s5077_s0  ;;  %vm2876_vm4 = vcmask 130048   ;;  %vm4673_vm5 = vcmask 523264   ;;  %s536_s18 = scalar_lea.vmem %s6705_s16, %s4850_s20 }
  0x10   : > { %5290 = vmatpush3.msra.mxu1 %v632_v3  ;;  %5279 = vmatpush3.msra.mxu0 %v547_v4  ;;  %v5897_v9 = vld [vmem:[%s527_s28] sm:$0xff]  ;;  %vm544_vm3 = vcmp.le.s32.totalorder %v5950_v28, %v5948_v27  ;;  %v4865_v40 = vld [vmem:[%s6691_s2 + $0x30] sm:$0xff]  ;;  %v4864_v41 = vld [vmem:[%s6691_s2 + $0x28] sm:$0xff] }
  0x11   : > { %5291 = vmatprep.subr.mxu1 %v5762_v2  ;;  %5280 = vmatprep.subr.mxu0 %v5762_v2  ;;  %v711_v13 = vld [vmem:[%s6695_s6] sm:$0xff]  ;;  %v4873_v46 = vld [vmem:[%s6693_s4 + $0x38] sm:$0xff]  ;;  %v4872_v47 = vld [vmem:[%s6693_s4 + $0x30] sm:$0xff] }
  0x12   : > { %5292 = vmatpush3.msra.mxu1 %v631_v5  ;;  %5281 = vmatpush3.msra.mxu0 %v546_v6  ;;  %v4856_v14 = vld [vmem:[%s6694_s5] ss:$0 sm:$0xff]  ;;  %v4871_v48 = vld [vmem:[%s6693_s4 + $0x28] sm:$0xff]  ;;  %v4875_v54 = vld [vmem:[%s6694_s5 + $0x1] ss:$0 sm:$0xff] }
  0x13   : > { %5293 = vmatprep.subr.mxu1 %v5762_v2  ;;  %5282 = vmatprep.subr.mxu0 %v5762_v2  ;;  %v4854_v15 = vld [vmem:[%s6692_s3] ss:$0 sm:$0xff]  ;;  %v4868_v55 = vld [vmem:[%s6692_s3 + $0x1] ss:$0 sm:$0xff]  ;;  %v4880_v60 = vld [vmem:[%s6695_s6 + $0x38] sm:$0xff] }
  0x14   : > { %5294 = vmatpush3.msra.mxu1 %v630_v7  ;;  %5295 = vmatprep.mubr.msk.f32.mxu1 %vm5763_vm1, %v5762_v2  ;;  %v4858_v22 = vld [vmem:[%s6696_s7] ss:$0 sm:$0xff]  ;;  %v4879_v61 = vld [vmem:[%s6695_s6 + $0x30] sm:$0xff]  ;;  %v4878_v62 = vld [vmem:[%s6695_s6 + $0x28] sm:$0xff] }
  0x15   : > { %5283 = vmatpush3.msra.mxu0 %v545_v8  ;;  %5284 = vmatprep.mubr.msk.f32.mxu0 %vm5763_vm1, %v5762_v2  ;;  %v4863_v42 = vld [vmem:[%s6691_s2 + $0x20] sm:$0xff]  ;;  %v4940_v27 = vld [vmem:[%s6697_s8 + $0x18] sm:$0xff] }
  0x16   : > { %5296 = vmatmul.mubr.msk.f32.vlgmr.msra.gmra.mxu1 %vm556_vm0, %v5897_v9  ;;  %5285 = vmatmul.mubr.msk.f32.vlgmr.msra.gmra.mxu0 %vm556_vm0, %v5897_v9  ;;  %v4870_v49 = vld [vmem:[%s6693_s4 + $0x20] sm:$0xff] }
  0x17   : > { %5298 = vmatprep.subr.mxu0 %v5762_v2  ;;  %5306 = vmatprep.mubr.msk.f32.mxu0 %vm5763_vm1, %v5762_v2  ;;  %v4877_v63 = vld [vmem:[%s6695_s6 + $0x20] sm:$0xff] }
  0x18   : > { %5299 = vmatpush3.msra.mxu0 %v714_v10  ;;  %5314 = vmatprep.subr.mxu1 %v5762_v2 }
  0x19   : > { %5300 = vmatprep.subr.mxu0 %v5762_v2  ;;  %5316 = vmatprep.mubr.msk.f32.mxu1 %vm5763_vm1, %v5762_v2 }
  0x1a   : > { %5301 = vmatpush3.msra.mxu0 %v713_v11 }
  0x1b   : > { %5302 = vmatprep.subr.mxu0 %v5762_v2 }
  0x1c   : > { %5303 = vmatpush3.msra.mxu0 %v712_v12  ;;  %v4882_v12 = vld [vmem:[%s6696_s7 + $0x1] ss:$0 sm:$0xff] }
  0x1d   : > { %5304 = vmatprep.subr.mxu0 %v5762_v2 }
  0x1e   : > { %5305 = vmatpush3.msra.mxu0 %v711_v13 }
  0x1f   : > { %5307 = vmatmul.mubr.msk.f32.vlgmr.msra.gmra.mxu0 %vm556_vm0, %v5897_v9  ;;  %5309 = vmatprep.subr.mxu0 %v5762_v2 }
  0x20   : > { %5311 = vmatprep.mubr.msk.f32.mxu0 %vm5763_vm1, %v5762_v2 }
  0xd6   : > { %v707_v16 = vpop.f32.mrf.mxu1  ;;  %v626_v17 = vpop.f32.mrf.mxu0 }
  0xd7   : > { %v708_v18 = vadd.f32 %v4856_v14, %v707_v16  ;;  %v627_v19 = vadd.f32 %v4854_v15, %v626_v17  ;;  %v4887_v16 = vld [vmem:[%s6697_s8 + $0x8] sm:$0xff] }
  0xd8   : > { %v5297_v20 = vpop.f32.mrf.mxu1  ;;  %v5286_v21 = vpop.f32.mrf.mxu0 }
  0xd9   : > { %5310 = vmatpush3.xpose.msk.msra.mxu0 %vm792_vm2, %v708_v18  ;;  %v955_v20 = vld [vmem:[%s6697_s8] sm:$0xff]  ;;  %v4900_v21 = vld [vmem:[%s6693_s4 + $0x58] sm:$0xff] }
  0xda   : > { %5319 = vmatprep.subr.mxu0 %v5762_v2 }
  0xdc   : > { %5312 = vmatmul.mubr.msk.f32.vlgmr.msra.gmra.mxu0 %vm792_vm2, %v627_v19 }
  0xdd   : > { %5327 = vmatprep.mubr.msk.f32.mxu0 %vm5763_vm1, %v5762_v2  ;;  %5320 = vmatpush3.msra.mxu0 %v4866_v39 }
  0xde   : > { %5321 = vmatprep.subr.mxu0 %v5762_v2 }
  0xdf   : > { %v788_v23 = vpop.f32.mrf.mxu0  ;;  %5322 = vmatpush3.msra.mxu0 %v4865_v40 }
  0xe0   : > { %v789_v24 = vadd.f32 %v4858_v22, %v788_v23  ;;  %5323 = vmatprep.subr.mxu0 %v5762_v2  ;;  %v4899_v22 = vld [vmem:[%s6693_s4 + $0x50] sm:$0xff]  ;;  %v4898_v23 = vld [vmem:[%s6693_s4 + $0x48] sm:$0xff] }
  0xe1   : > { %v5308_v25 = vpop.f32.mrf.mxu0  ;;  %5324 = vmatpush3.msra.mxu0 %v4864_v41  ;;  %v4895_v41 = vld [vmem:[%s6692_s3 + $0x2] ss:$0 sm:$0xff] }
  0xe2   : > { %5315 = vmatpush3.msra.mxu1 %v789_v24  ;;  %5325 = vmatprep.subr.mxu0 %v5762_v2  ;;  %v4897_v24 = vld [vmem:[%s6693_s4 + $0x40] sm:$0xff]  ;;  %v4893_v25 = vld [vmem:[%s6691_s2 + $0x58] sm:$0xff] }
  0xe3   : > { %5330 = vmatprep.subr.mxu1 %v5762_v2  ;;  %5326 = vmatpush3.msra.mxu0 %v4863_v42 }
  0xe4   : > { %5328 = vmatmul.mubr.msk.f32.vlgmr.msra.gmra.mxu0 %vm556_vm0, %v5897_v9  ;;  %5341 = vmatprep.subr.mxu0 %v5762_v2 }
  0xe5   : > { %5349 = vmatprep.mubr.msk.f32.mxu0 %vm5763_vm1, %v5762_v2  ;;  %5342 = vmatpush3.msra.mxu0 %v4880_v60 }
  0xe6   : > { %5343 = vmatprep.subr.mxu0 %v5762_v2 }
  0xe7   : > { %5344 = vmatpush3.msra.mxu0 %v4879_v61 }
  0xe8   : > { %5345 = vmatprep.subr.mxu0 %v5762_v2 }
  0xe9   : > { %5346 = vmatpush3.msra.mxu0 %v4878_v62 }
  0xea   : > { %5347 = vmatprep.subr.mxu0 %v5762_v2 }
  0xeb   : > { %5348 = vmatpush3.msra.mxu0 %v4877_v63  ;;  %v4914_v63 = vld [vmem:[%s6697_s8 + $0x10] sm:$0xff] }
  0xec   : > { %5350 = vmatmul.mubr.msk.f32.vlgmr.msra.gmra.mxu0 %vm556_vm0, %v5897_v9  ;;  %5362 = vmatprep.subr.mxu0 %v5762_v2 }
  0xed   : > { %5364 = vmatprep.mubr.msk.f32.mxu0 %vm5763_vm1, %v5762_v2  ;;  %5363 = vmatpush3.msra.mxu0 %v4887_v16 }
  0xee   : > { %5372 = vmatprep.subr.mxu0 %v5762_v2 }
 0x19c   : > { %v865_v29 = vpop.f32.mrf.mxu0 }
 0x19d   : > { %v869_v30 = vmul.f32 0.35355338, %v865_v29  ;;  %v4892_v29 = vld [vmem:[%s6691_s2 + $0x50] sm:$0xff] }
 0x19e   : > { %v5313_v31 = vpop.f32.mrf.mxu0 }
 0x19f   : > { %v870_v32 = vsel %vm544_vm3, %v869_v30, -1e+30  ;;  %v4891_v31 = vld [vmem:[%s6691_s2 + $0x48] sm:$0xff] }
 0x1a0   : > { %v871_v33 = vsel %vm792_vm2, %v870_v32, -inf }
 0x1a1   : > { %872 = vmax.xlane.f32.xlu0 %v871_v33  ;;  %v4890_v33 = vld [vmem:[%s6691_s2 + $0x40] sm:$0xff] }
 0x1a4   : > { %v1035_v50 = vpop.f32.mrf.mxu0 }
 0x1a5   : > { %v1036_v58 = vadd.f32 %v4868_v55, %v1035_v50 }
 0x1a6   : > { %v5329_v51 = vpop.f32.mrf.mxu0 }
 0x1ac   : > { %v1201_v13 = vpop.f32.mrf.mxu0 }
 0x1ad   : > { %v1202_v14 = vadd.f32 %v4882_v12, %v1201_v13  ;;  %v4924_v13 = vld [vmem:[%s6693_s4 + $0x68] sm:$0xff] }
 0x1ae   : > { %v5351_v15 = vpop.f32.mrf.mxu0 }
 0x22a   : > { %v873_v34 = vpop.xlane.xlu0 %872 }
 0x22b   : > { %v874_v35 = vsub.f32 %v870_v32, %v873_v34 }
 0x22d   : > { %v875_v36 = vmul.f32 1.442695, %v874_v35  ;;  %v4902_v35 = vld [vmem:[%s6694_s5 + $0x2] ss:$0 sm:$0xff] }
 0x22f   : > { %5716 = vpow2.f32 %v875_v36 }
 0x23c   : > { %v5717_v37 = vpop.eup %5716 }
 0x23d   : > { %v877_v38 = vsel %vm792_vm2, %v5717_v37, 0.0 }
 0x23e   : > { %878 = vadd.xlane.f32.xlu0 %v877_v38 }
 0x2c7   : > { %v879_v43 = vpop.xlane.xlu0 %878 }
 0x2c8   : > { %5718 = vrcp.f32 %v879_v43 }
 0x2d5   : > { %v5719_v44 = vpop.eup %5718 }
 0x2d6   : > { %v881_v45 = vmul.f32 %v5719_v44, %v5717_v37 }
 0x2d8   : > { %5317 = vmatmul.mubr.msk.f32.vlgmr.msra.gmra.mxu1 %vm792_vm2, %v881_v45  ;;  %v4907_v45 = vld [vmem:[%s6695_s6 + $0x58] sm:$0xff] }
 0x2d9   : > { %5331 = vmatpush3.msra.mxu1 %v4873_v46  ;;  %5338 = vmatprep.mubr.msk.f32.mxu1 %vm5763_vm1, %v5762_v2  ;;  %v4906_v46 = vld [vmem:[%s6695_s6 + $0x50] sm:$0xff] }
 0x2da   : > { %5332 = vmatprep.subr.mxu1 %v5762_v2 }
 0x2db   : > { %5333 = vmatpush3.msra.mxu1 %v4872_v47  ;;  %v4905_v47 = vld [vmem:[%s6695_s6 + $0x48] sm:$0xff] }
 0x2dc   : > { %5334 = vmatprep.subr.mxu1 %v5762_v2 }
 0x2dd   : > { %5335 = vmatpush3.msra.mxu1 %v4871_v48  ;;  %v4904_v48 = vld [vmem:[%s6695_s6 + $0x40] sm:$0xff] }
 0x2de   : > { %5336 = vmatprep.subr.mxu1 %v5762_v2 }
 0x2df   : > { %5337 = vmatpush3.msra.mxu1 %v4870_v49 }
 0x2e0   : > { %5339 = vmatmul.mubr.msk.f32.vlgmr.msra.gmra.mxu1 %vm556_vm0, %v5897_v9  ;;  %5352 = vmatprep.subr.mxu1 %v5762_v2 }
 0x2e1   : > { %5354 = vmatprep.mubr.msk.f32.mxu1 %vm5763_vm1, %v5762_v2 }
 0x398   : > { %v951_v52 = vpop.f32.mrf.mxu1 }
 0x39a   : > { %v5318_v53 = vpop.f32.mrf.mxu1 }
 0x3a0   : > { %v1118_v56 = vpop.f32.mrf.mxu1 }
 0x3a1   : > { %v1119_v57 = vadd.f32 %v4875_v54, %v1118_v56 }
 0x3a2   : > { %v5340_v59 = vpop.f32.mrf.mxu1 }
 0x3a3   : > { %5353 = vmatpush3.xpose.msk.msra.mxu1 %vm792_vm2, %v1119_v57  ;;  %v4909_v59 = vld [vmem:[%s6696_s7 + $0x2] ss:$0 sm:$0xff] }
 0x3a4   : > { %5357 = vmatprep.subr.mxu1 %v5762_v2 }
 0x3a6   : > { %5355 = vmatmul.mubr.msk.f32.vlgmr.msra.gmra.mxu1 %vm792_vm2, %v1036_v58 }
 0x3a7   : > { %5359 = vmatprep.mubr.msk.f32.mxu1 %vm5763_vm1, %v5762_v2  ;;  %5358 = vmatpush3.msra.mxu1 %v1202_v14  ;;  %v4923_v14 = vld [vmem:[%s6693_s4 + $0x60] sm:$0xff] }
 0x3a8   : > { %5367 = vmatprep.subr.mxu1 %v5762_v2 }
 0x466   : > { %v1277_v0 = vpop.f32.mrf.mxu1 }
 0x467   : > { %v1281_v1 = vmul.f32 0.35355338, %v1277_v0 }
 0x468   : > { %v5356_v3 = vpop.f32.mrf.mxu1 }
 0x469   : > { %v1282_v4 = vsel %vm544_vm3, %v1281_v1, -1e+30 }
 0x46a   : > { %v1283_v5 = vsel %vm792_vm2, %v1282_v4, -inf }
 0x46b   : > { %1284 = vmax.xlane.f32.xlu1 %v1283_v5  ;;  %v4918_v5 = vld [vmem:[%s6691_s2 + $0x70] sm:$0xff] }
 0x4f4   : > { %v1285_v6 = vpop.xlane.xlu1 %1284 }
 0x4f5   : > { %v1286_v7 = vsub.f32 %v1282_v4, %v1285_v6  ;;  %v4919_v4 = vld [vmem:[%s6691_s2 + $0x78] sm:$0xff]  ;;  %v4917_v6 = vld [vmem:[%s6691_s2 + $0x68] sm:$0xff] }
 0x4f7   : > { %v1287_v8 = vmul.f32 1.442695, %v1286_v7  ;;  %v4916_v7 = vld [vmem:[%s6691_s2 + $0x60] sm:$0xff] }
 0x4f9   : > { %5720 = vpow2.f32 %v1287_v8  ;;  %v4926_v8 = vld [vmem:[%s6693_s4 + $0x78] sm:$0xff] }
 0x506   : > { %v5721_v10 = vpop.eup %5720 }
 0x507   : > { %v1289_v11 = vsel %vm792_vm2, %v5721_v10, 0.0 }
 0x508   : > { %1290 = vadd.xlane.f32.xlu1 %v1289_v11  ;;  %v4925_v11 = vld [vmem:[%s6693_s4 + $0x70] sm:$0xff] }
 0x591   : > { %v1291_v17 = vpop.xlane.xlu1 %1290 }
 0x592   : > { %5722 = vrcp.f32 %v1291_v17 }
 0x59f   : > { %v5723_v18 = vpop.eup %5722 }
 0x5a0   : > { %v1293_v19 = vmul.f32 %v5723_v18, %v5721_v10 }
 0x5a2   : > { %5360 = vmatmul.mubr.msk.f32.vlgmr.msra.gmra.mxu1 %vm792_vm2, %v1293_v19 }
 0x5a3   : > { %5368 = vmatpush3.msra.mxu1 %v955_v20  ;;  %5369 = vmatprep.mubr.msk.f32.mxu1 %vm5763_vm1, %v5762_v2 }
 0x5a4   : > { %5383 = vmatprep.subr.mxu1 %v5762_v2 }
 0x5a6   : > { %5370 = vmatmul.mubr.msk.f32.vlgmr.msra.gmra.mxu1 %vm792_vm2, %v951_v52 }
 0x5a7   : > { %5384 = vmatpush3.msra.mxu1 %v4900_v21  ;;  %5391 = vmatprep.mubr.msk.f32.mxu1 %vm5763_vm1, %v5762_v2  ;;  %v4928_v21 = vld [vmem:[%s6694_s5 + $0x3] ss:$0 sm:$0xff] }
 0x5a8   : > { %5385 = vmatprep.subr.mxu1 %v5762_v2 }
 0x5a9   : > { %5386 = vmatpush3.msra.mxu1 %v4899_v22  ;;  %v4921_v22 = vld [vmem:[%s6692_s3 + $0x3] ss:$0 sm:$0xff] }
 0x5aa   : > { %5387 = vmatprep.subr.mxu1 %v5762_v2 }
 0x5ab   : > { %5388 = vmatpush3.msra.mxu1 %v4898_v23 }
 0x5ac   : > { %5389 = vmatprep.subr.mxu1 %v5762_v2 }
 0x5ad   : > { %5390 = vmatpush3.msra.mxu1 %v4897_v24 }
 0x5ae   : > { %5392 = vmatmul.mubr.msk.f32.vlgmr.msra.gmra.mxu1 %vm556_vm0, %v5897_v9  ;;  %5405 = vmatprep.subr.mxu1 %v5762_v2 }
 0x5af   : > { %5407 = vmatprep.mubr.msk.f32.mxu1 %vm5763_vm1, %v5762_v2 }
 0x662   : > { %v1363_v26 = vpop.f32.mrf.mxu1 }
 0x663   : > { %5365 = vmatmul.mubr.msk.f32.vlgmr.msra.gmra.mxu0 %vm792_vm2, %v1363_v26 }
 0x664   : > { %5373 = vmatpush3.msra.mxu0 %v4893_v25  ;;  %v5361_v30 = vpop.f32.mrf.mxu1  ;;  %5380 = vmatprep.mubr.msk.f32.mxu0 %vm5763_vm1, %v5762_v2 }
 0x665   : > { %5374 = vmatprep.subr.mxu0 %v5762_v2  ;;  %v4932_v30 = vld [vmem:[%s6695_s6 + $0x70] sm:$0xff] }
 0x666   : > { %5375 = vmatpush3.msra.mxu0 %v4892_v29  ;;  %v6089_v32 = vpop.f32.mrf.mxu1  ;;  %v4933_v29 = vld [vmem:[%s6695_s6 + $0x78] sm:$0xff] }
 0x667   : > { %5376 = vmatprep.subr.mxu0 %v5762_v2 }
 0x668   : > { %5377 = vmatpush3.msra.mxu0 %v4891_v31  ;;  %v5371_v34 = vpop.f32.mrf.mxu1  ;;  %v4931_v31 = vld [vmem:[%s6695_s6 + $0x68] sm:$0xff] }
 0x669   : > { %5378 = vmatprep.subr.mxu0 %v5762_v2 }
 0x66a   : > { %5379 = vmatpush3.msra.mxu0 %v4890_v33 }
 0x66b   : > { %5381 = vmatmul.mubr.msk.f32.vlgmr.msra.gmra.mxu0 %vm556_vm0, %v5897_v9  ;;  %5394 = vmatprep.subr.mxu0 %v5762_v2 }
 0x66c   : > { %5402 = vmatprep.mubr.msk.f32.mxu0 %vm5763_vm1, %v5762_v2  ;;  %5395 = vmatpush3.msra.mxu0 %v4907_v45 }
 0x66d   : > { %5396 = vmatprep.subr.mxu0 %v5762_v2 }
 0x66e   : > { %v1677_v36 = vpop.f32.mrf.mxu1  ;;  %5397 = vmatpush3.msra.mxu0 %v4906_v46 }
 0x66f   : > { %v1678_v37 = vadd.f32 %v4902_v35, %v1677_v36  ;;  %5398 = vmatprep.subr.mxu0 %v5762_v2 }
 0x670   : > { %v5393_v38 = vpop.f32.mrf.mxu1  ;;  %5399 = vmatpush3.msra.mxu0 %v4905_v47 }
 0x671   : > { %5406 = vmatpush3.xpose.msk.msra.mxu1 %vm792_vm2, %v1678_v37  ;;  %5400 = vmatprep.subr.mxu0 %v5762_v2 }
 0x672   : > { %5410 = vmatprep.subr.mxu1 %v5762_v2  ;;  %5401 = vmatpush3.msra.mxu0 %v4904_v48 }
 0x673   : > { %5403 = vmatmul.mubr.msk.f32.vlgmr.msra.gmra.mxu0 %vm556_vm0, %v5897_v9  ;;  %5415 = vmatprep.subr.mxu0 %v5762_v2 }
 0x674   : > { %5417 = vmatprep.mubr.msk.f32.mxu0 %vm5763_vm1, %v5762_v2  ;;  %5416 = vmatpush3.msra.mxu0 %v4914_v63  ;;  %v4955_v63 = vld [vmem:[%s6693_s4 + $0x98] sm:$0xff] }
 0x675   : > { %5431 = vmatprep.subr.mxu0 %v5762_v2 }
 0x723   : > { %v6106_v39 = vpop.f32.mrf.mxu0 }
 0x724   : > { %v1512_v17 = vadd.f32 %v6089_v32, %v6106_v39  ;;  %v4930_v32 = vld [vmem:[%s6695_s6 + $0x60] sm:$0xff] }
 0x725   : > { %v5366_v40 = vpop.f32.mrf.mxu0 }
 0x72b   : > { %v1594_v42 = vpop.f32.mrf.mxu0 }
 0x72c   : > { %v1595_v43 = vadd.f32 %v4895_v41, %v1594_v42 }
 0x72d   : > { %v5382_v44 = vpop.f32.mrf.mxu0 }
 0x72e   : > { %5408 = vmatmul.mubr.msk.f32.vlgmr.msra.gmra.mxu1 %vm792_vm2, %v1595_v43  ;;  %v4935_v43 = vld [vmem:[%s6696_s7 + $0x3] ss:$0 sm:$0xff] }
 0x72f   : > { %5412 = vmatprep.mubr.msk.f32.mxu1 %vm5763_vm1, %v5762_v2 }
 0x733   : > { %v1760_v60 = vpop.f32.mrf.mxu0 }
 0x734   : > { %v1761_v61 = vadd.f32 %v4909_v59, %v1760_v60 }
 0x735   : > { %v5404_v62 = vpop.f32.mrf.mxu0 }
 0x736   : > { %5411 = vmatpush3.msra.mxu1 %v1761_v61 }
 0x737   : > { %5420 = vmatprep.subr.mxu1 %v5762_v2 }
 0x7ee   : > { %v1836_v49 = vpop.f32.mrf.mxu1 }
 0x7ef   : > { %v1840_v50 = vmul.f32 0.35355338, %v1836_v49 }
 0x7f0   : > { %v5409_v51 = vpop.f32.mrf.mxu1 }
 0x7f1   : > { %v1841_v52 = vsel %vm544_vm3, %v1840_v50, -1e+30 }
 0x7f2   : > { %v1842_v53 = vsel %vm792_vm2, %v1841_v52, -inf }
 0x7f3   : > { %1843 = vmax.xlane.f32.xlu0 %v1842_v53 }
 0x87c   : > { %v1844_v54 = vpop.xlane.xlu0 %1843 }
 0x87d   : > { %v1845_v55 = vsub.f32 %v1841_v52, %v1844_v54  ;;  %v4942_v52 = vld [vmem:[%s6698_s9] ss:$0 sm:$0xff] }
 0x87f   : > { %v1846_v56 = vmul.f32 1.442695, %v1845_v55 }
 0x881   : > { %5724 = vpow2.f32 %v1846_v56 }
 0x88e   : > { %v5725_v57 = vpop.eup %5724 }
 0x88f   : > { %v1848_v58 = vsel %vm792_vm2, %v5725_v57, 0.0 }
 0x890   : > { %1849 = vadd.xlane.f32.xlu1 %v1848_v58 }
 0x919   : > { %v1850_v0 = vpop.xlane.xlu1 %1849 }
 0x91a   : > { %5726 = vrcp.f32 %v1850_v0  ;;  %v4953_v0 = vld [vmem:[%s6693_s4 + $0x88] sm:$0xff] }
 0x927   : > { %v5727_v1 = vpop.eup %5726 }
 0x928   : > { %v1852_v3 = vmul.f32 %v5727_v1, %v5725_v57  ;;  %v4952_v1 = vld [vmem:[%s6693_s4 + $0x80] sm:$0xff] }
 0x92a   : > { %5413 = vmatmul.mubr.msk.f32.vlgmr.msra.gmra.mxu1 %vm792_vm2, %v1852_v3  ;;  %v6264_v3 = vld [vmem:[%s532_s24] sm:$0xff] }
 0x92b   : > { %5428 = vmatprep.mubr.msk.f32.mxu1 %vm5763_vm1, %v5762_v2  ;;  %5421 = vmatpush3.msra.mxu1 %v4919_v4  ;;  %v6268_v4 = vld [vmem:[%s532_s24 + $0x8] sm:$0xff] }
 0x92c   : > { %5422 = vmatprep.subr.mxu1 %v5762_v2 }
 0x92d   : > { %5423 = vmatpush3.msra.mxu1 %v4918_v5  ;;  %v4948_v5 = vld [vmem:[%s6691_s2 + $0x98] sm:$0xff] }
 0x92e   : > { %5424 = vmatprep.subr.mxu1 %v5762_v2 }
 0x92f   : > { %5425 = vmatpush3.msra.mxu1 %v4917_v6  ;;  %v4947_v6 = vld [vmem:[%s6691_s2 + $0x90] sm:$0xff] }
 0x930   : > { %5426 = vmatprep.subr.mxu1 %v5762_v2 }
 0x931   : > { %5427 = vmatpush3.msra.mxu1 %v4916_v7  ;;  %v4946_v7 = vld [vmem:[%s6691_s2 + $0x88] sm:$0xff] }
 0x932   : > { %5429 = vmatmul.mubr.msk.f32.vlgmr.msra.gmra.mxu1 %vm556_vm0, %v5897_v9  ;;  %5442 = vmatprep.subr.mxu1 %v5762_v2 }
 0x933   : > { %5450 = vmatprep.mubr.msk.f32.mxu1 %vm5763_vm1, %v5762_v2  ;;  %5443 = vmatpush3.msra.mxu1 %v4933_v29  ;;  %v4976_v29 = vld [vmem:[%s6691_s2 + $0xb8] sm:$0xff] }
 0x934   : > { %5444 = vmatprep.subr.mxu1 %v5762_v2 }
 0x935   : > { %5445 = vmatpush3.msra.mxu1 %v4932_v30 }
 0x936   : > { %5446 = vmatprep.subr.mxu1 %v5762_v2 }
 0x937   : > { %5447 = vmatpush3.msra.mxu1 %v4931_v31  ;;  %v4975_v31 = vld [vmem:[%s6691_s2 + $0xb0] sm:$0xff] }
 0x938   : > { %5448 = vmatprep.subr.mxu1 %v5762_v2 }
 0x939   : > { %5449 = vmatpush3.msra.mxu1 %v4930_v32  ;;  %v4974_v32 = vld [vmem:[%s6691_s2 + $0xa8] sm:$0xff] }
 0x93a   : > { %5451 = vmatmul.mubr.msk.f32.vlgmr.msra.gmra.mxu1 %vm556_vm0, %v5897_v9  ;;  %5463 = vmatprep.subr.mxu1 %v5762_v2 }
 0x93b   : > { %5465 = vmatprep.mubr.msk.f32.mxu1 %vm5763_vm1, %v5762_v2  ;;  %5464 = vmatpush3.msra.mxu1 %v4940_v27 }
 0x93c   : > { %5479 = vmatprep.subr.mxu1 %v4955_v63 }
 0x9ea   : > { %v1922_v10 = vpop.f32.mrf.mxu1 }
 0x9eb   : > { %5418 = vmatmul.mubr.msk.f32.vlgmr.msra.gmra.mxu0 %vm792_vm2, %v1922_v10 }
 0x9ec   : > { %5432 = vmatpush3.msra.mxu0 %v4926_v8  ;;  %v5414_v12 = vpop.f32.mrf.mxu1  ;;  %5439 = vmatprep.mubr.msk.f32.mxu0 %vm5763_vm1, %v5762_v2  ;;  %v4945_v8 = vld [vmem:[%s6691_s2 + $0x80] sm:$0xff] }
 0x9ed   : > { %5433 = vmatprep.subr.mxu0 %v5762_v2 }
 0x9ee   : > { %5434 = vmatpush3.msra.mxu0 %v4925_v11 }
 0x9ef   : > { %5435 = vmatprep.subr.mxu0 %v5762_v2 }
 0x9f0   : > { %5436 = vmatpush3.msra.mxu0 %v4924_v13 }
 0x9f1   : > { %5437 = vmatprep.subr.mxu0 %v5762_v2 }
 0x9f2   : > { %5438 = vmatpush3.msra.mxu0 %v4923_v14  ;;  %v2081_v15 = vpop.f32.mrf.mxu1  ;;  %v4943_v14 = vld [vmem:[%s6699_s10] ss:$0 sm:$0xff] }
 0x9f3   : > { %5440 = vmatmul.mubr.msk.f32.vlgmr.msra.gmra.mxu0 %vm556_vm0, %v5897_v9  ;;  %5453 = vmatprep.subr.mxu0 %v5762_v2  ;;  %v2082_v25 = vadd.f32 %v4921_v22, %v2081_v15 }
 0x9f4   : > { %5455 = vmatprep.mubr.msk.f32.mxu0 %vm5763_vm1, %v5762_v2  ;;  %v5430_v16 = vpop.f32.mrf.mxu1 }
 0x9f5   : > { %v4944_v16 = vld [vmem:[%s6700_s11] ss:$0 sm:$0xff] }
 0x9fa   : > { %v2247_v44 = vpop.f32.mrf.mxu1 }
 0x9fb   : > { %v2248_v45 = vadd.f32 %v4935_v43, %v2247_v44 }
 0x9fc   : > { %v5452_v46 = vpop.f32.mrf.mxu1 }
 0xaab   : > { %v1997_v18 = vpop.f32.mrf.mxu0 }
 0xaac   : > { %v2001_v19 = vadd.f32 %v1997_v18, %v1512_v17 }
 0xaad   : > { %v5419_v20 = vpop.f32.mrf.mxu0 }
 0xab3   : > { %v2164_v23 = vpop.f32.mrf.mxu0 }
 0xab4   : > { %v2165_v24 = vadd.f32 %v4928_v21, %v2164_v23 }
 0xab5   : > { %v5441_v26 = vpop.f32.mrf.mxu0 }
 0xab6   : > { %5454 = vmatpush3.xpose.msk.msra.mxu0 %vm792_vm2, %v2165_v24  ;;  %v4950_v24 = vld [vmem:[%s6692_s3 + $0x4] ss:$0 sm:$0xff] }
 0xab7   : > { %5458 = vmatprep.subr.mxu0 %v5762_v2 }
 0xab9   : > { %5456 = vmatmul.mubr.msk.f32.vlgmr.msra.gmra.mxu0 %vm792_vm2, %v2082_v25 }
 0xaba   : > { %5460 = vmatprep.mubr.msk.f32.mxu0 %vm5763_vm1, %v5762_v2  ;;  %5459 = vmatpush3.msra.mxu0 %v2248_v45 }
 0xabb   : > { %5468 = vmatprep.subr.mxu0 %v5762_v2 }
 0xb79   : > { %v2323_v33 = vpop.f32.mrf.mxu0 }
 0xb7a   : > { %v2327_v34 = vmul.f32 0.35355338, %v2323_v33  ;;  %v4973_v33 = vld [vmem:[%s6691_s2 + $0xa0] sm:$0xff] }
 0xb7b   : > { %v5457_v35 = vpop.f32.mrf.mxu0 }
 0xb7c   : > { %v2328_v36 = vsel %vm544_vm3, %v2327_v34, -1e+30  ;;  %v4963_v34 = vld [vmem:[%s6695_s6 + $0x98] sm:$0xff]  ;;  %v4962_v35 = vld [vmem:[%s6695_s6 + $0x90] sm:$0xff] }
 0xb7d   : > { %v2329_v37 = vsel %vm792_vm2, %v2328_v36, -inf }
 0xb7e   : > { %2330 = vmax.xlane.f32.xlu0 %v2329_v37  ;;  %v4960_v37 = vld [vmem:[%s6695_s6 + $0x80] sm:$0xff] }
 0xc07   : > { %v2331_v38 = vpop.xlane.xlu0 %2330 }
 0xc08   : > { %v2332_v39 = vsub.f32 %v2328_v36, %v2331_v38  ;;  %v4961_v36 = vld [vmem:[%s6695_s6 + $0x88] sm:$0xff] }
 0xc0a   : > { %v2333_v40 = vmul.f32 1.442695, %v2332_v39 }
 0xc0c   : > { %5728 = vpow2.f32 %v2333_v40 }
 0xc19   : > { %v5729_v41 = vpop.eup %5728 }
 0xc1a   : > { %v2335_v42 = vsel %vm792_vm2, %v5729_v41, 0.0 }
 0xc1b   : > { %2336 = vadd.xlane.f32.xlu1 %v2335_v42 }
 0xca4   : > { %v2337_v28 = vpop.xlane.xlu1 %2336 }
 0xca5   : > { %5730 = vrcp.f32 %v2337_v28 }
 0xcb2   : > { %v5731_v47 = vpop.eup %5730 }
 0xcb3   : > { %v2339_v48 = vmul.f32 %v5731_v47, %v5729_v41 }
 0xcb5   : > { %5461 = vmatmul.mubr.msk.f32.vlgmr.msra.gmra.mxu0 %vm792_vm2, %v2339_v48  ;;  %v4965_v48 = vld [vmem:[%s6696_s7 + $0x4] ss:$0 sm:$0xff] }
 0xcb6   : > { %5476 = vmatprep.mubr.msk.f32.mxu0 %vm5763_vm1, %v5762_v2  ;;  %5469 = vmatpush3.msra.mxu0 %v4948_v5 }
 0xcb7   : > { %5470 = vmatprep.subr.mxu0 %v5762_v2 }
 0xcb8   : > { %5471 = vmatpush3.msra.mxu0 %v4947_v6  ;;  %v4991_v6 = vld [vmem:[%s6695_s6 + $0xb8] sm:$0xff] }
 0xcb9   : > { %5472 = vmatprep.subr.mxu0 %v5762_v2 }
 0xcba   : > { %5473 = vmatpush3.msra.mxu0 %v4946_v7  ;;  %v4990_v7 = vld [vmem:[%s6695_s6 + $0xb0] sm:$0xff] }
 0xcbb   : > { %5474 = vmatprep.subr.mxu0 %v5762_v2 }
 0xcbc   : > { %5475 = vmatpush3.msra.mxu0 %v4945_v8  ;;  %v4989_v8 = vld [vmem:[%s6695_s6 + $0xa8] sm:$0xff] }
 0xcbd   : > { %5490 = vmatprep.subr.mxu0 %v4963_v34 }
 0xd75   : > { %v2409_v49 = vpop.f32.mrf.mxu0 }
 0xd76   : > { %5466 = vmatmul.mubr.msk.f32.vlgmr.msra.gmra.mxu1 %vm792_vm2, %v2409_v49 }
 0xd77   : > { %v5462_v50 = vpop.f32.mrf.mxu0  ;;  %5480 = vmatpush3.msra.mxu1 %v4955_v63  ;;  %5487 = vmatprep.mubr.msk.f32.mxu1 %vm556_vm0, %v6264_v3 }
 0xe36   : > { %v2484_v51 = vpop.f32.mrf.mxu1 }
 0xe37   : > { %v2488_v53 = vadd.f32 %v2484_v51, %v2001_v19  ;;  %v4957_v19 = vld [vmem:[%s6694_s5 + $0x4] ss:$0 sm:$0xff] }
 0xe38   : > { %v5467_v54 = vpop.f32.mrf.mxu1 }
 0xe39   : > { %v2496_v55 = vadd.f32 %v4942_v52, %v2488_v53  ;;  %v4983_v52 = vld [vmem:[%s6693_s4 + $0xb8] sm:$0xff] }
 0xe3b   : > { %v2497_v56 = vadd.f32 %v2496_v55, %v5897_v9  ;;  %v4954_v9 = vld [vmem:[%s6693_s4 + $0x90] sm:$0xff] }
 0xe3c   : > { %5481 = vmatprep.subr.mxu1 %v4954_v9 }
 0xe3d   : > { %v2500_v57 = vsel %vm556_vm0, %v2497_v56, 0.0  ;;  %5482 = vmatpush3.msra.mxu1 %v4954_v9 }
 0xe3e   : > { %2501 = vadd.xlane.f32.xlu0 %v2500_v57  ;;  %5483 = vmatprep.subr.mxu1 %v4953_v0  ;;  %v4981_v57 = vld [vmem:[%s6693_s4 + $0xa8] sm:$0xff] }
 0xe3f   : > { %5484 = vmatpush3.msra.mxu1 %v4953_v0  ;;  %v4978_v0 = vld [vmem:[%s6692_s3 + $0x5] ss:$0 sm:$0xff] }
 0xe40   : > { %5485 = vmatprep.subr.mxu1 %v4952_v1 }
 0xe41   : > { %5486 = vmatpush3.msra.mxu1 %v4952_v1 }
 0xe42   : > { %5488 = vmatmul.mubr.msk.f32.vlgmr.msra.gmra.mxu1 %vm556_vm0, %v6268_v4  ;;  %5501 = vmatprep.subr.mxu1 %v5762_v2 }
 0xe43   : > { %5505 = vmatprep.mubr.msk.f32.mxu1 %vm5763_vm1, %v5762_v2 }
 0xec7   : > { %v2502_v58 = vpop.xlane.xlu0 %2501 }
 0xec8   : > { %v2504_v59 = vmul.f32 0.03125, %v2502_v58  ;;  %v4980_v58 = vld [vmem:[%s6693_s4 + $0xa0] sm:$0xff] }
 0xeca   : > { %v2505_v60 = vsub.f32 %v2497_v56, %v2504_v59  ;;  %v4982_v56 = vld [vmem:[%s6693_s4 + $0xb0] sm:$0xff] }
 0xecc   : > { %v2506_v61 = vmul.f32 %v2505_v60, %v2505_v60 }
 0xece   : > { %v2507_v62 = vsel %vm556_vm0, %v2506_v61, 0.0  ;;  %v4985_v61 = vld [vmem:[%s6694_s5 + $0x5] ss:$0 sm:$0xff] }
 0xecf   : > { %2508 = vadd.xlane.f32.xlu1 %v2507_v62 }
 0xf02   : > { %v5489_v20 = vpop.f32.mrf.mxu1 }
 0xf03   : > { %v2705_v21 = vadd.f32 %v5489_v20, %v4957_v19 }
 0xf04   : > { %v2699_v22 = vpop.f32.mrf.mxu1 }
 0xf05   : > { %5502 = vmatpush3.xpose.msk.msra.mxu1 %vm792_vm2, %v2705_v21  ;;  %v2700_v23 = vadd.f32 %v4957_v19, %v2699_v22  ;;  %v4993_v22 = vld [vmem:[%s6696_s7 + $0x5] ss:$0 sm:$0xff] }
 0xf06   : > { %5503 = vmatprep.subr.mxu1 %v5762_v2 }
 0xf09   : > { %5504 = vmatpush3.xpose.msk.msra.mxu1 %vm792_vm2, %v2700_v23 }
 0xf0a   : > { %5515 = vmatprep.subr.mxu1 %v5762_v2 }
 0xf58   : > { %v2509_v10 = vpop.xlane.xlu1 %2508 }
 0xf59   : > { %v2510_v11 = vmul.f32 0.03125, %v2509_v10  ;;  %v4988_v10 = vld [vmem:[%s6695_s6 + $0xa0] sm:$0xff] }
 0xf5b   : > { %v2511_v12 = vadd.f32 1e-05, %v2510_v11 }
 0xf5d   : > { %5732 = vrsqrt.f32 %v2511_v12 }
 0xf6a   : > { %v5733_v13 = vpop.eup %5732 }
 0xf6b   : > { %v2513_v15 = vmul.f32 %v5733_v13, %v2505_v60 }
 0xf6d   : > { %v2520_v17 = vmul.f32 %v4943_v14, %v2513_v15 }
 0xf6f   : > { %v6296_v18 = vadd.f32 %v4944_v16, %v2520_v17 }
 0xf71   : > { %5477 = vmatmul.mubr.msk.f32.vlgmr.msra.gmra.mxu0 %vm556_vm0, %v6296_v18 }
 0xf72   : > { %5498 = vmatprep.mubr.msk.f32.mxu0 %vm556_vm0, %v6264_v3  ;;  %5491 = vmatpush3.msra.mxu0 %v4963_v34  ;;  %v5012_v34 = vld [vmem:[%s6693_s4 + $0xd0] sm:$0xff] }
 0xf73   : > { %5492 = vmatprep.subr.mxu0 %v4962_v35 }
 0xf74   : > { %5493 = vmatpush3.msra.mxu0 %v4962_v35  ;;  %v5011_v35 = vld [vmem:[%s6693_s4 + $0xc8] sm:$0xff] }
 0xf75   : > { %5494 = vmatprep.subr.mxu0 %v4961_v36 }
 0xf76   : > { %5495 = vmatpush3.msra.mxu0 %v4961_v36  ;;  %v5010_v36 = vld [vmem:[%s6693_s4 + $0xc0] sm:$0xff] }
 0xf77   : > { %5496 = vmatprep.subr.mxu0 %v4960_v37 }
 0xf78   : > { %5497 = vmatpush3.msra.mxu0 %v4960_v37  ;;  %v5006_v37 = vld [vmem:[%s6691_s2 + $0xd8] sm:$0xff] }
 0xf79   : > { %5499 = vmatmul.mubr.msk.f32.vlgmr.msra.gmra.mxu0 %vm556_vm0, %v6268_v4  ;;  %5508 = vmatprep.subr.mxu0 %v5762_v2 }
 0xf7a   : > { %5512 = vmatprep.mubr.msk.f32.mxu0 %vm5763_vm1, %v5762_v2 }
0x1031   : > { %v2610_v25 = vpop.f32.mrf.mxu0 }
0x1032   : > { %v2611_v26 = vadd.f32 %v4950_v24, %v2610_v25 }
0x1033   : > { %v5478_v30 = vpop.f32.mrf.mxu0 }
0x1034   : > { %5506 = vmatmul.mubr.msk.f32.vlgmr.msra.gmra.mxu1 %vm792_vm2, %v2611_v26  ;;  %v5000_v26 = vld [vmem:[%s6697_s8 + $0x28] sm:$0xff] }
0x1035   : > { %5516 = vmatpush3.msra.mxu1 %v4976_v29  ;;  %5523 = vmatprep.mubr.msk.f32.mxu1 %vm5763_vm1, %v5762_v2 }
0x1036   : > { %5517 = vmatprep.subr.mxu1 %v5762_v2 }
0x1037   : > { %5518 = vmatpush3.msra.mxu1 %v4975_v31 }
0x1038   : > { %5519 = vmatprep.subr.mxu1 %v5762_v2 }
0x1039   : > { %5520 = vmatpush3.msra.mxu1 %v4974_v32  ;;  %v5500_v47 = vpop.f32.mrf.mxu0  ;;  %v4972_v32 = vld [vmem:[%s6697_s8 + $0x20] sm:$0xff] }
0x103a   : > { %5521 = vmatprep.subr.mxu1 %v5762_v2  ;;  %v2793_v49 = vadd.f32 %v5500_v47, %v4965_v48 }
0x103b   : > { %5522 = vmatpush3.msra.mxu1 %v4973_v33  ;;  %v2787_v50 = vpop.f32.mrf.mxu0  ;;  %v5013_v33 = vld [vmem:[%s6693_s4 + $0xd8] sm:$0xff] }
0x103c   : > { %5524 = vmatmul.mubr.msk.f32.vlgmr.msra.gmra.mxu1 %vm556_vm0, %v6296_v18  ;;  %v2788_v51 = vadd.f32 %v4965_v48, %v2787_v50  ;;  %5509 = vmatpush3.msra.mxu0 %v2793_v49  ;;  %v5008_v50 = vld [vmem:[%s6692_s3 + $0x6] ss:$0 sm:$0xff] }
0x103d   : > { %5545 = vmatprep.mubr.msk.f32.mxu1 %vm556_vm0, %v6264_v3  ;;  %5510 = vmatprep.subr.mxu0 %v5762_v2 }
0x103e   : > { %5511 = vmatpush3.msra.mxu0 %v2788_v51  ;;  %5537 = vmatprep.subr.mxu1 %v4991_v6 }
0x103f   : > { %5526 = vmatprep.subr.mxu0 %v4983_v52  ;;  %5538 = vmatpush3.msra.mxu1 %v4991_v6  ;;  %v5023_v6 = vld [vmem:[%s6696_s7 + $0x6] ss:$0 sm:$0xff] }
0x1040   : > { %5539 = vmatprep.subr.mxu1 %v4990_v7 }
0x1041   : > { %5540 = vmatpush3.msra.mxu1 %v4990_v7 }
0x1042   : > { %5541 = vmatprep.subr.mxu1 %v4989_v8 }
0x1043   : > { %5542 = vmatpush3.msra.mxu1 %v4989_v8 }
0x1044   : > { %5543 = vmatprep.subr.mxu1 %v4988_v10 }
0x1045   : > { %5544 = vmatpush3.msra.mxu1 %v4988_v10 }
0x1046   : > { %5546 = vmatmul.mubr.msk.f32.vlgmr.msra.gmra.mxu1 %vm556_vm0, %v6268_v4  ;;  %5555 = vmatprep.subr.mxu1 %v5762_v2 }
0x1047   : > { %5559 = vmatprep.mubr.msk.f32.mxu1 %vm5763_vm1, %v5762_v2 }
0x10f4   : > { %v2871_v38 = vpop.f32.mrf.mxu1 }
0x10f5   : > { %v2875_v39 = vmul.f32 0.35355338, %v2871_v38 }
0x10f6   : > { %v5507_v40 = vpop.f32.mrf.mxu1 }
0x10f7   : > { %v2877_v41 = vsel %vm2876_vm4, %v2875_v39, -inf }
0x10f8   : > { %2878 = vmax.xlane.f32.xlu0 %v2877_v41  ;;  %v5004_v41 = vld [vmem:[%s6691_s2 + $0xc8] sm:$0xff] }
0x10fc   : > { %v3042_v42 = vpop.f32.mrf.mxu1 }
0x10fd   : > { %v3043_v5 = vadd.f32 %v4978_v0, %v3042_v42 }
0x10fe   : > { %v5525_v43 = vpop.f32.mrf.mxu1 }
0x10ff   : > { %v5003_v43 = vld [vmem:[%s6691_s2 + $0xc0] sm:$0xff] }
0x1106   : > { %v5547_v21 = vpop.f32.mrf.mxu1 }
0x1107   : > { %v3219_v23 = vadd.f32 %v5547_v21, %v4993_v22 }
0x1108   : > { %v3213_v24 = vpop.f32.mrf.mxu1 }
0x1109   : > { %v3214_v25 = vadd.f32 %v4993_v22, %v3213_v24  ;;  %5556 = vmatpush3.msra.mxu1 %v3219_v23  ;;  %v5041_v22 = vld [vmem:[%s6693_s4 + $0xf0] sm:$0xff]  ;;  %v5040_v24 = vld [vmem:[%s6693_s4 + $0xe8] sm:$0xff] }
0x110a   : > { %5557 = vmatprep.subr.mxu1 %v5762_v2 }
0x110b   : > { %5558 = vmatpush3.msra.mxu1 %v3214_v25  ;;  %v5039_v25 = vld [vmem:[%s6693_s4 + $0xe0] sm:$0xff] }
0x110c   : > { %5567 = vmatprep.subr.mxu1 %v5762_v2 }
0x1181   : > { %v2879_v44 = vpop.xlane.xlu0 %2878 }
0x1182   : > { %v2880_v45 = vsub.f32 %v2875_v39, %v2879_v44  ;;  %v5005_v39 = vld [vmem:[%s6691_s2 + $0xd0] sm:$0xff] }
0x1184   : > { %v2881_v46 = vmul.f32 1.442695, %v2880_v45  ;;  %v5015_v45 = vld [vmem:[%s6694_s5 + $0x6] ss:$0 sm:$0xff] }
0x1186   : > { %5734 = vpow2.f32 %v2881_v46 }
0x1193   : > { %v5735_v27 = vpop.eup %5734 }
0x1194   : > { %v2883_v28 = vsel %vm2876_vm4, %v5735_v27, 0.0 }
0x1195   : > { %2884 = vadd.xlane.f32.xlu1 %v2883_v28 }
0x121e   : > { %v2885_v53 = vpop.xlane.xlu1 %2884 }
0x121f   : > { %5736 = vrcp.f32 %v2885_v53 }
0x122c   : > { %v5737_v54 = vpop.eup %5736 }
0x122d   : > { %v2887_v55 = vmul.f32 %v5737_v54, %v5735_v27  ;;  %v5021_v54 = vld [vmem:[%s6695_s6 + $0xd8] sm:$0xff] }
0x122f   : > { %5513 = vmatmul.mubr.msk.f32.vlgmr.msra.gmra.mxu0 %vm2876_vm4, %v2887_v55  ;;  %v5020_v55 = vld [vmem:[%s6695_s6 + $0xd0] sm:$0xff] }
0x1230   : > { %5527 = vmatpush3.msra.mxu0 %v4983_v52  ;;  %5534 = vmatprep.mubr.msk.f32.mxu0 %vm556_vm0, %v6264_v3 }
0x1231   : > { %5528 = vmatprep.subr.mxu0 %v4982_v56 }
0x1232   : > { %5529 = vmatpush3.msra.mxu0 %v4982_v56  ;;  %v5019_v56 = vld [vmem:[%s6695_s6 + $0xc8] sm:$0xff] }
0x1233   : > { %5530 = vmatprep.subr.mxu0 %v4981_v57 }
0x1234   : > { %5531 = vmatpush3.msra.mxu0 %v4981_v57  ;;  %v5018_v57 = vld [vmem:[%s6695_s6 + $0xc0] sm:$0xff] }
0x1235   : > { %5532 = vmatprep.subr.mxu0 %v4980_v58 }
0x1236   : > { %5533 = vmatpush3.msra.mxu0 %v4980_v58 }
0x1237   : > { %5535 = vmatmul.mubr.msk.f32.vlgmr.msra.gmra.mxu0 %vm556_vm0, %v6268_v4  ;;  %5548 = vmatprep.subr.mxu0 %v5762_v2 }
0x1238   : > { %5552 = vmatprep.mubr.msk.f32.mxu0 %vm5763_vm1, %v5762_v2 }
0x12ef   : > { %v6377_v59 = vpop.f32.mrf.mxu0 }
0x12f1   : > { %v5514_v60 = vpop.f32.mrf.mxu0 }
0x12f7   : > { %v5536_v62 = vpop.f32.mrf.mxu0 }
0x12f8   : > { %v3131_v63 = vadd.f32 %v5536_v62, %v4985_v61 }
0x12f9   : > { %v3125_v9 = vpop.f32.mrf.mxu0 }
0x12fa   : > { %5549 = vmatpush3.xpose.msk.msra.mxu0 %vm792_vm2, %v3131_v63  ;;  %v3126_v1 = vadd.f32 %v4985_v61, %v3125_v9 }
0x12fb   : > { %5550 = vmatprep.subr.mxu0 %v5762_v2 }
0x12fe   : > { %5551 = vmatpush3.xpose.msk.msra.mxu0 %vm792_vm2, %v3126_v1 }
0x12ff   : > { %5562 = vmatprep.subr.mxu0 %v5762_v2 }
0x1301   : > { %5553 = vmatmul.mubr.msk.f32.vlgmr.msra.gmra.mxu0 %vm792_vm2, %v3043_v5 }
0x1302   : > { %5564 = vmatprep.mubr.msk.f32.mxu0 %vm5763_vm1, %v5762_v2  ;;  %5563 = vmatpush3.msra.mxu0 %v5000_v26 }
0x1303   : > { %5572 = vmatprep.subr.mxu0 %v5762_v2 }
0x13c1   : > { %v3297_v11 = vpop.f32.mrf.mxu0 }
0x13c2   : > { %v3301_v12 = vmul.f32 0.35355338, %v3297_v11  ;;  %v5030_v11 = vld [vmem:[%s6697_s8 + $0x30] sm:$0xff] }
0x13c3   : > { %v5554_v13 = vpop.f32.mrf.mxu0 }
0x13c4   : > { %v3302_v14 = vsel %vm2876_vm4, %v3301_v12, -inf }
0x13c5   : > { %3303 = vmax.xlane.f32.xlu0 %v3302_v14 }
0x144e   : > { %v3304_v15 = vpop.xlane.xlu0 %3303 }
0x144f   : > { %v3305_v16 = vsub.f32 %v3301_v12, %v3304_v15  ;;  %v5035_v15 = vld [vmem:[%s6691_s2 + $0xf8] sm:$0xff] }
0x1451   : > { %v3306_v17 = vmul.f32 1.442695, %v3305_v16  ;;  %v5034_v16 = vld [vmem:[%s6691_s2 + $0xf0] sm:$0xff] }
0x1453   : > { %5738 = vpow2.f32 %v3306_v17  ;;  %v5033_v17 = vld [vmem:[%s6691_s2 + $0xe8] sm:$0xff] }
0x1460   : > { %v5739_v19 = vpop.eup %5738 }
0x1461   : > { %v3308_v20 = vsel %vm2876_vm4, %v5739_v19, 0.0 }
0x1462   : > { %3309 = vadd.xlane.f32.xlu1 %v3308_v20  ;;  %v5042_v20 = vld [vmem:[%s6693_s4 + $0xf8] sm:$0xff] }
0x14eb   : > { %v3310_v29 = vpop.xlane.xlu1 %3309 }
0x14ec   : > { %5740 = vrcp.f32 %v3310_v29 }
0x14f9   : > { %v5741_v30 = vpop.eup %5740 }
0x14fa   : > { %v3312_v31 = vmul.f32 %v5741_v30, %v5739_v19  ;;  %v5032_v19 = vld [vmem:[%s6691_s2 + $0xe0] sm:$0xff] }
0x14fc   : > { %5560 = vmatmul.mubr.msk.f32.vlgmr.msra.gmra.mxu1 %vm2876_vm4, %v3312_v31 }
0x14fd   : > { %5568 = vmatpush3.msra.mxu1 %v4972_v32  ;;  %5569 = vmatprep.mubr.msk.f32.mxu1 %vm5763_vm1, %v5762_v2 }
0x14fe   : > { %5583 = vmatprep.subr.mxu1 %v5013_v33 }
0x1500   : > { %5570 = vmatmul.mubr.msk.f32.vlgmr.msra.gmra.mxu1 %vm792_vm2, %v6377_v59 }
0x1501   : > { %5584 = vmatpush3.msra.mxu1 %v5013_v33  ;;  %5591 = vmatprep.mubr.msk.f32.mxu1 %vm556_vm0, %v6264_v3  ;;  %v5044_v33 = vld [vmem:[%s6694_s5 + $0x7] ss:$0 sm:$0xff] }
0x1502   : > { %5585 = vmatprep.subr.mxu1 %v5012_v34 }
0x1503   : > { %5586 = vmatpush3.msra.mxu1 %v5012_v34 }
0x1504   : > { %5587 = vmatprep.subr.mxu1 %v5011_v35 }
0x1505   : > { %5588 = vmatpush3.msra.mxu1 %v5011_v35 }
0x1506   : > { %5589 = vmatprep.subr.mxu1 %v5010_v36 }
0x1507   : > { %5590 = vmatpush3.msra.mxu1 %v5010_v36 }
0x1508   : > { %5592 = vmatmul.mubr.msk.f32.vlgmr.msra.gmra.mxu1 %vm556_vm0, %v6268_v4  ;;  %5605 = vmatprep.subr.mxu1 %v5762_v2 }
0x1509   : > { %5609 = vmatprep.mubr.msk.f32.mxu1 %vm5763_vm1, %v5762_v2 }
0x15bc   : > { %v3382_v38 = vpop.f32.mrf.mxu1 }
0x15bd   : > { %5565 = vmatmul.mubr.msk.f32.vlgmr.msra.gmra.mxu0 %vm792_vm2, %v3382_v38 }
0x15be   : > { %5573 = vmatpush3.msra.mxu0 %v5006_v37  ;;  %v5561_v40 = vpop.f32.mrf.mxu1  ;;  %5580 = vmatprep.mubr.msk.f32.mxu0 %vm5763_vm1, %v5762_v2  ;;  %v5037_v37 = vld [vmem:[%s6692_s3 + $0x7] ss:$0 sm:$0xff] }
0x15bf   : > { %5574 = vmatprep.subr.mxu0 %v5762_v2  ;;  %v5050_v40 = vld [vmem:[%s6695_s6 + $0xf8] sm:$0xff] }
0x15c0   : > { %5575 = vmatpush3.msra.mxu0 %v5005_v39  ;;  %v6460_v42 = vpop.f32.mrf.mxu1 }
0x15c1   : > { %5576 = vmatprep.subr.mxu0 %v5762_v2 }
0x15c2   : > { %5577 = vmatpush3.msra.mxu0 %v5004_v41  ;;  %v5571_v44 = vpop.f32.mrf.mxu1  ;;  %v5049_v41 = vld [vmem:[%s6695_s6 + $0xf0] sm:$0xff] }
0x15c3   : > { %5578 = vmatprep.subr.mxu0 %v5762_v2 }
0x15c4   : > { %5579 = vmatpush3.msra.mxu0 %v5003_v43  ;;  %v5047_v43 = vld [vmem:[%s6695_s6 + $0xe0] sm:$0xff] }
0x15c5   : > { %5581 = vmatmul.mubr.msk.f32.vlgmr.msra.gmra.mxu0 %vm556_vm0, %v6296_v18  ;;  %5594 = vmatprep.subr.mxu0 %v5021_v54 }
0x15c6   : > { %5602 = vmatprep.mubr.msk.f32.mxu0 %vm556_vm0, %v6264_v3  ;;  %5595 = vmatpush3.msra.mxu0 %v5021_v54 }
0x15c7   : > { %5596 = vmatprep.subr.mxu0 %v5020_v55 }
0x15c8   : > { %v5593_v46 = vpop.f32.mrf.mxu1  ;;  %5597 = vmatpush3.msra.mxu0 %v5020_v55  ;;  %v5059_v55 = vld [vmem:[%s6697_s8 + $0x38] sm:$0xff] }
0x15c9   : > { %v3702_v27 = vadd.f32 %v5593_v46, %v5015_v45  ;;  %5598 = vmatprep.subr.mxu0 %v5019_v56 }
0x15ca   : > { %v3696_v28 = vpop.f32.mrf.mxu1  ;;  %5599 = vmatpush3.msra.mxu0 %v5019_v56 }
0x15cb   : > { %5606 = vmatpush3.xpose.msk.msra.mxu1 %vm792_vm2, %v3702_v27  ;;  %v3697_v47 = vadd.f32 %v5015_v45, %v3696_v28  ;;  %5600 = vmatprep.subr.mxu0 %v5018_v57 }
0x15cc   : > { %5607 = vmatprep.subr.mxu1 %v5762_v2  ;;  %5601 = vmatpush3.msra.mxu0 %v5018_v57 }
0x15cd   : > { %5603 = vmatmul.mubr.msk.f32.vlgmr.msra.gmra.mxu0 %vm556_vm0, %v6268_v4  ;;  %5612 = vmatprep.subr.mxu0 %v5762_v2 }
0x15ce   : > { %5616 = vmatprep.mubr.msk.f32.mxu0 %vm5763_vm1, %v5762_v2 }
0x15cf   : > { %5608 = vmatpush3.xpose.msk.msra.mxu1 %vm792_vm2, %v3697_v47 }
0x15d0   : > { %5619 = vmatprep.subr.mxu1 %v5762_v2 }
0x167d   : > { %v6478_v48 = vpop.f32.mrf.mxu0 }
0x167f   : > { %v5566_v49 = vpop.f32.mrf.mxu0 }
0x1685   : > { %v3613_v51 = vpop.f32.mrf.mxu0 }
0x1686   : > { %v3614_v52 = vadd.f32 %v5008_v50, %v3613_v51  ;;  %v5052_v51 = vld [vmem:[%s6696_s7 + $0x7] ss:$0 sm:$0xff] }
0x1687   : > { %v5582_v53 = vpop.f32.mrf.mxu0 }
0x1688   : > { %5610 = vmatmul.mubr.msk.f32.vlgmr.msra.gmra.mxu1 %vm792_vm2, %v3614_v52 }
0x1689   : > { %5621 = vmatprep.mubr.msk.f32.mxu1 %vm5763_vm1, %v5762_v2  ;;  %5620 = vmatpush3.msra.mxu1 %v5030_v11 }
0x168a   : > { %5635 = vmatprep.subr.mxu1 %v5042_v20 }
0x168d   : > { %v5604_v5 = vpop.f32.mrf.mxu0 }
0x168e   : > { %v3790_v7 = vadd.f32 %v5604_v5, %v5023_v6 }
0x168f   : > { %v3784_v8 = vpop.f32.mrf.mxu0 }
0x1690   : > { %v3785_v10 = vadd.f32 %v5023_v6, %v3784_v8  ;;  %5613 = vmatpush3.msra.mxu0 %v3790_v7 }
0x1691   : > { %5614 = vmatprep.subr.mxu0 %v5762_v2 }
0x1692   : > { %5615 = vmatpush3.msra.mxu0 %v3785_v10 }
0x1693   : > { %5624 = vmatprep.subr.mxu0 %v5762_v2 }
0x1748   : > { %v3868_v58 = vpop.f32.mrf.mxu1 }
0x1749   : > { %v3872_v59 = vmul.f32 0.35355338, %v3868_v58 }
0x174a   : > { %v5611_v60 = vpop.f32.mrf.mxu1 }
0x174b   : > { %v3873_v61 = vsel %vm2876_vm4, %v3872_v59, -inf }
0x174c   : > { %3874 = vmax.xlane.f32.xlu0 %v3873_v61 }
0x17d5   : > { %v3875_v62 = vpop.xlane.xlu0 %3874 }
0x17d6   : > { %v3876_v63 = vsub.f32 %v3872_v59, %v3875_v62  ;;  %v5062_v62 = vld [vmem:[%s6698_s9 + $0x1] ss:$0 sm:$0xff] }
0x17d8   : > { %v3877_v9 = vmul.f32 1.442695, %v3876_v63 }
0x17da   : > { %5742 = vpow2.f32 %v3877_v9 }
0x17e7   : > { %v5743_v0 = vpop.eup %5742 }
0x17e8   : > { %v3879_v1 = vsel %vm2876_vm4, %v5743_v0, 0.0 }
0x17e9   : > { %3880 = vadd.xlane.f32.xlu1 %v3879_v1 }
0x1872   : > { %v3881_v12 = vpop.xlane.xlu1 %3880 }
0x1873   : > { %5744 = vrcp.f32 %v3881_v12  ;;  %v4576_v12 = vld [vmem:[%s6701_s12 + $0x18] sm:$0xff] }
0x1880   : > { %v5745_v13 = vpop.eup %5744 }
0x1881   : > { %v3883_v14 = vmul.f32 %v5745_v13, %v5743_v0  ;;  %v4574_v13 = vld [vmem:[%s6701_s12 + $0x8] sm:$0xff] }
0x1883   : > { %5617 = vmatmul.mubr.msk.f32.vlgmr.msra.gmra.mxu0 %vm2876_vm4, %v3883_v14  ;;  %v4573_v14 = vld [vmem:[%s6701_s12] sm:$0xff] }
0x1884   : > { %5625 = vmatpush3.msra.mxu0 %v5035_v15  ;;  %5632 = vmatprep.mubr.msk.f32.mxu0 %vm5763_vm1, %v5762_v2  ;;  %v4665_v15 = vld [vmem:[%s6703_s14 + $0x38] sm:$0xff] }
0x1885   : > { %5626 = vmatprep.subr.mxu0 %v5762_v2 }
0x1886   : > { %5627 = vmatpush3.msra.mxu0 %v5034_v16  ;;  %v4664_v16 = vld [vmem:[%s6703_s14 + $0x30] sm:$0xff] }
0x1887   : > { %5628 = vmatprep.subr.mxu0 %v5762_v2 }
0x1888   : > { %5629 = vmatpush3.msra.mxu0 %v5033_v17  ;;  %v4663_v17 = vld [vmem:[%s6703_s14 + $0x28] sm:$0xff] }
0x1889   : > { %5630 = vmatprep.subr.mxu0 %v5762_v2 }
0x188a   : > { %5631 = vmatpush3.msra.mxu0 %v5032_v19  ;;  %v4662_v19 = vld [vmem:[%s6703_s14 + $0x20] sm:$0xff] }
0x188b   : > { %5633 = vmatmul.mubr.msk.f32.vlgmr.msra.gmra.mxu0 %vm556_vm0, %v6296_v18  ;;  %5646 = vmatprep.subr.mxu0 %v5050_v40 }
0x188c   : > { %5654 = vmatprep.mubr.msk.f32.mxu0 %vm556_vm0, %v6264_v3  ;;  %5647 = vmatpush3.msra.mxu0 %v5050_v40 }
0x188d   : > { %5648 = vmatprep.subr.mxu0 %v5049_v41 }
0x188e   : > { %5649 = vmatpush3.msra.mxu0 %v5049_v41 }
0x1943   : > { %v3953_v21 = vpop.f32.mrf.mxu0 }
0x1944   : > { %5622 = vmatmul.mubr.msk.f32.vlgmr.msra.gmra.mxu1 %vm792_vm2, %v3953_v21 }
0x1945   : > { %5636 = vmatpush3.msra.mxu1 %v5042_v20  ;;  %v5618_v23 = vpop.f32.mrf.mxu0  ;;  %5643 = vmatprep.mubr.msk.f32.mxu1 %vm556_vm0, %v6264_v3  ;;  %v3531_v3 = vadd.f32 %v6460_v42, %v6478_v48  ;;  %v5048_v42 = vld [vmem:[%s6695_s6 + $0xe8] sm:$0xff]  ;;  %v4661_v20 = vld [vmem:[%s6703_s14 + $0x18] sm:$0xff] }
0x1946   : > { %5637 = vmatprep.subr.mxu1 %v5041_v22  ;;  %5650 = vmatprep.subr.mxu0 %v5048_v42 }
0x1947   : > { %5638 = vmatpush3.msra.mxu1 %v5041_v22  ;;  %5651 = vmatpush3.msra.mxu0 %v5048_v42 }
0x1948   : > { %5639 = vmatprep.subr.mxu1 %v5040_v24  ;;  %5652 = vmatprep.subr.mxu0 %v5047_v43 }
0x1949   : > { %5640 = vmatpush3.msra.mxu1 %v5040_v24  ;;  %5653 = vmatpush3.msra.mxu0 %v5047_v43 }
0x194a   : > { %5641 = vmatprep.subr.mxu1 %v5039_v25  ;;  %5655 = vmatmul.mubr.msk.f32.vlgmr.msra.gmra.mxu0 %vm556_vm0, %v6268_v4 }
0x194b   : > { %v4112_v26 = vpop.f32.mrf.mxu0  ;;  %5642 = vmatpush3.msra.mxu1 %v5039_v25  ;;  %5664 = vmatprep.subr.mxu0 %v5762_v2  ;;  %v5065_v25 = vld [vmem:[%s6699_s10 + $0x1] ss:$0 sm:$0xff] }
0x194c   : > { %5644 = vmatmul.mubr.msk.f32.vlgmr.msra.gmra.mxu1 %vm556_vm0, %v6268_v4  ;;  %5657 = vmatprep.subr.mxu1 %v5762_v2  ;;  %v4113_v39 = vadd.f32 %v5037_v37, %v4112_v26 }
0x194d   : > { %v5634_v29 = vpop.f32.mrf.mxu0  ;;  %5661 = vmatprep.mubr.msk.f32.mxu1 %vm5763_vm1, %v5762_v2  ;;  %5668 = vmatprep.mubr.msk.f32.mxu0 %vm5763_vm1, %v5762_v2 }
0x194e   : > { %v5066_v29 = vld [vmem:[%s6700_s11 + $0x1] ss:$0 sm:$0xff] }
0x1a04   : > { %v4028_v30 = vpop.f32.mrf.mxu1 }
0x1a05   : > { %v6557_v31 = vadd.f32 %v4028_v30, %v3531_v3 }
0x1a06   : > { %v5623_v32 = vpop.f32.mrf.mxu1 }
0x1a07   : > { %v4659_v32 = vld [vmem:[%s6703_s14 + $0x8] sm:$0xff] }
0x1a0a   : > { %v5656_v4 = vpop.f32.mrf.mxu0 }
0x1a0b   : > { %v4289_v52 = vadd.f32 %v5656_v4, %v5052_v51  ;;  %v5073_v4 = vld [vmem:[%s6699_s10 + $0x2] ss:$0 sm:$0xff] }
0x1a0c   : > { %v5645_v34 = vpop.f32.mrf.mxu1  ;;  %v4283_v53 = vpop.f32.mrf.mxu0 }
0x1a0d   : > { %v4201_v35 = vadd.f32 %v5645_v34, %v5044_v33  ;;  %v4284_v54 = vadd.f32 %v5052_v51, %v4283_v53  ;;  %5665 = vmatpush3.msra.mxu0 %v4289_v52  ;;  %v5067_v34 = vld [vmem:[%s6702_s13] ss:$0 sm:$0xff]  ;;  %v5074_v52 = vld [vmem:[%s6700_s11 + $0x2] ss:$0 sm:$0xff] }
0x1a0e   : > { %v4195_v36 = vpop.f32.mrf.mxu1  ;;  %5666 = vmatprep.subr.mxu0 %v5762_v2 }
0x1a0f   : > { %5658 = vmatpush3.xpose.msk.msra.mxu1 %vm792_vm2, %v4201_v35  ;;  %v4196_v38 = vadd.f32 %v5044_v33, %v4195_v36  ;;  %5667 = vmatpush3.msra.mxu0 %v4284_v54  ;;  %v4658_v33 = vld [vmem:[%s6703_s14] sm:$0xff] }
0x1a10   : > { %5659 = vmatprep.subr.mxu1 %v5762_v2  ;;  %5676 = vmatprep.subr.mxu0 %v5762_v2 }
0x1a13   : > { %5660 = vmatpush3.xpose.msk.msra.mxu1 %vm792_vm2, %v4196_v38 }
0x1a14   : > { %5671 = vmatprep.subr.mxu1 %v5762_v2 }
0x1a16   : > { %5662 = vmatmul.mubr.msk.f32.vlgmr.msra.gmra.mxu1 %vm792_vm2, %v4113_v39  ;;  %v5069_v39 = vld [vmem:[%s6704_s15] ss:$0 sm:$0xff] }
0x1a17   : > { %5673 = vmatprep.mubr.msk.f32.mxu1 %vm5763_vm1, %v5762_v2  ;;  %5672 = vmatpush3.msra.mxu1 %v5059_v55 }
0x1a18   : > { %5687 = vmatprep.subr.mxu1 %v5762_v2 }
0x1ad6   : > { %v4367_v44 = vpop.f32.mrf.mxu1 }
0x1ad7   : > { %v4371_v45 = vmul.f32 0.35355338, %v4367_v44 }
0x1ad8   : > { %v5663_v46 = vpop.f32.mrf.mxu1 }
0x1ad9   : > { %v4372_v27 = vsel %vm2876_vm4, %v4371_v45, -inf }
0x1ada   : > { %4373 = vmax.xlane.f32.xlu0 %v4372_v27 }
0x1b63   : > { %v4374_v28 = vpop.xlane.xlu0 %4373 }
0x1b64   : > { %v4375_v47 = vsub.f32 %v4371_v45, %v4374_v28 }
0x1b66   : > { %v4376_v48 = vmul.f32 1.442695, %v4375_v47 }
0x1b68   : > { %5746 = vpow2.f32 %v4376_v48 }
0x1b75   : > { %v5747_v49 = vpop.eup %5746 }
0x1b76   : > { %v4378_v50 = vsel %vm2876_vm4, %v5747_v49, 0.0 }
0x1b77   : > { %4379 = vadd.xlane.f32.xlu1 %v4378_v50 }
0x1c00   : > { %v4380_v56 = vpop.xlane.xlu1 %4379 }
0x1c01   : > { %5748 = vrcp.f32 %v4380_v56 }
0x1c0e   : > { %v5749_v57 = vpop.eup %5748 }
0x1c0f   : > { %v4382_v58 = vmul.f32 %v5749_v57, %v5747_v49 }
0x1c11   : > { %5669 = vmatmul.mubr.msk.f32.vlgmr.msra.gmra.mxu0 %vm2876_vm4, %v4382_v58 }
0x1c12   : > { %5684 = vmatprep.mubr.msk.f32.mxu0 %vm5763_vm1, %v5762_v2  ;;  %5677 = vmatpush3.msra.mxu0 %v4576_v12 }
0x1c13   : > { %5678 = vmatprep.subr.mxu0 %v5762_v2 }
0x1cd1   : > { %v4452_v59 = vpop.f32.mrf.mxu0 }
0x1cd2   : > { %5674 = vmatmul.mubr.msk.f32.vlgmr.msra.gmra.mxu1 %vm792_vm2, %v4452_v59 }
0x1cd3   : > { %v5670_v60 = vpop.f32.mrf.mxu0  ;;  %5703 = vmatprep.mubr.msk.f32.mxu1 %vm5763_vm1, %v5762_v2  ;;  %5688 = vmatpush3.msra.mxu1 %v4665_v15 }
0x1cd4   : > { %5689 = vmatprep.subr.mxu1 %v5762_v2 }
0x1cd5   : > { %5690 = vmatpush3.msra.mxu1 %v4664_v16 }
0x1cd6   : > { %5691 = vmatprep.subr.mxu1 %v5762_v2 }
0x1cd7   : > { %5692 = vmatpush3.msra.mxu1 %v4663_v17 }
0x1cd8   : > { %5693 = vmatprep.subr.mxu1 %v5762_v2 }
0x1cd9   : > { %5694 = vmatpush3.msra.mxu1 %v4662_v19 }
0x1cda   : > { %5695 = vmatprep.subr.mxu1 %v5762_v2 }
0x1cdb   : > { %5696 = vmatpush3.msra.mxu1 %v4661_v20 }
0x1cdc   : > { %5697 = vmatprep.subr.mxu1 %v5762_v2 }
0x1d92   : > { %v4527_v61 = vpop.f32.mrf.mxu1 }
0x1d93   : > { %v4531_v63 = vadd.f32 %v4527_v61, %v6557_v31  ;;  %v4660_v31 = vld [vmem:[%s6703_s14 + $0x10] sm:$0xff] }
0x1d94   : > { %v5675_v9 = vpop.f32.mrf.mxu1  ;;  %5698 = vmatpush3.msra.mxu1 %v4660_v31 }
0x1d95   : > { %v4540_v0 = vadd.f32 %v5062_v62, %v4531_v63  ;;  %5699 = vmatprep.subr.mxu1 %v5762_v2 }
0x1d96   : > { %5700 = vmatpush3.msra.mxu1 %v4659_v32 }
0x1d97   : > { %v4541_v1 = vadd.f32 %v4540_v0, %v6296_v18  ;;  %v4575_v18 = vld [vmem:[%s6701_s12 + $0x10] sm:$0xff]  ;;  %5701 = vmatprep.subr.mxu1 %v5762_v2 }
0x1d98   : > { %5679 = vmatpush3.msra.mxu0 %v4575_v18  ;;  %5702 = vmatpush3.msra.mxu1 %v4658_v33 }
0x1d99   : > { %v4546_v5 = vsel %vm556_vm0, %v4541_v1, 0.0  ;;  %5680 = vmatprep.subr.mxu0 %v5762_v2 }
0x1d9a   : > { %4547 = vadd.xlane.f32.xlu0 %v4546_v5  ;;  %5681 = vmatpush3.msra.mxu0 %v4574_v13 }
0x1d9b   : > { %5682 = vmatprep.subr.mxu0 %v5762_v2 }
0x1d9c   : > { %5683 = vmatpush3.msra.mxu0 %v4573_v14 }
0x1e23   : > { %v4548_v6 = vpop.xlane.xlu0 %4547 }
0x1e24   : > { %v4549_v7 = vmul.f32 0.03125, %v4548_v6 }
0x1e26   : > { %v4550_v8 = vsub.f32 %v4541_v1, %v4549_v7 }
0x1e28   : > { %v4551_v10 = vmul.f32 %v4550_v8, %v4550_v8 }
0x1e2a   : > { %v4552_v11 = vsel %vm556_vm0, %v4551_v10, 0.0 }
0x1e2b   : > { %4553 = vadd.xlane.f32.xlu1 %v4552_v11 }
0x1eb4   : > { %v4554_v21 = vpop.xlane.xlu1 %4553 }
0x1eb5   : > { %v4555_v22 = vmul.f32 0.03125, %v4554_v21 }
0x1eb7   : > { %v4556_v23 = vadd.f32 1e-05, %v4555_v22 }
0x1eb9   : > { %5750 = vrsqrt.f32 %v4556_v23 }
0x1ec6   : > { %v5751_v24 = vpop.eup %5750 }
0x1ec7   : > { %v4558_v26 = vmul.f32 %v5751_v24, %v4550_v8 }
0x1ec9   : > { %v4565_v3 = vmul.f32 %v5065_v25, %v4558_v26 }
0x1ecb   : > { %v4572_v30 = vadd.f32 %v5066_v29, %v4565_v3 }
0x1ecd   : > { %5685 = vmatmul.mubr.msk.f32.vlgmr.msra.gmra.mxu0 %vm556_vm0, %v4572_v30 }
0x1f8d   : > { %v4653_v35 = vpop.f32.mrf.mxu0 }
0x1f8e   : > { %v4654_v36 = vadd.f32 %v5067_v34, %v4653_v35 }
0x1f8f   : > { %v5686_v37 = vpop.f32.mrf.mxu0 }
0x1f90   : > { %v4657_v38 = vmax.f32 %v4654_v36, 0.0 }
0x1f92   : > { %5704 = vmatmul.mubr.msk.f32.vlgmr.msra.gmra.mxu1 %vm4673_vm5, %v4657_v38 }
0x2052   : > { %v4743_v2 = vpop.f32.mrf.mxu1 }
0x2053   : > { %v4744_v40 = vadd.f32 %v5069_v39, %v4743_v2 }
0x2054   : > { %v5705_v41 = vpop.f32.mrf.mxu1 }
0x2055   : > { %v4747_v42 = vadd.f32 %v4744_v40, %v4572_v30 }
0x2057   : > { %v4752_v43 = vsel %vm556_vm0, %v4747_v42, 0.0 }
0x2058   : > { %4753 = vadd.xlane.f32.xlu0 %v4752_v43 }
0x20e1   : > { %v4754_v44 = vpop.xlane.xlu0 %4753 }
0x20e2   : > { %v4755_v45 = vmul.f32 0.03125, %v4754_v44 }
0x20e4   : > { %v4756_v46 = vsub.f32 %v4747_v42, %v4755_v45 }
0x20e6   : > { %v4757_v27 = vmul.f32 %v4756_v46, %v4756_v46 }
0x20e8   : > { %v4758_v28 = vsel %vm556_vm0, %v4757_v27, 0.0 }
0x20e9   : > { %4759 = vadd.xlane.f32.xlu1 %v4758_v28 }
0x2172   : > { %v4760_v47 = vpop.xlane.xlu1 %4759 }
0x2173   : > { %v4761_v48 = vmul.f32 0.03125, %v4760_v47 }
0x2175   : > { %v4762_v49 = vadd.f32 1e-05, %v4761_v48 }
0x2177   : > { %5752 = vrsqrt.f32 %v4762_v49 }
0x2184   : > { %v5753_v50 = vpop.eup %5752 }
0x2185   : > { %v4764_v51 = vmul.f32 %v5753_v50, %v4756_v46 }
0x2187   : > { %v4771_v53 = vmul.f32 %v5073_v4, %v4764_v51 }
0x2189   : > { %v4778_v54 = vadd.f32 %v5074_v52, %v4771_v53 }
0x218b   : > { %4779 = vst.msk [vmem:[%s536_s18] sm:$0xff] %vm556_vm0, %v4778_v54 }
0x218c PF: > { %s26_s21 = sadd.s32 1, %s5760_s21  }
0x218d   : > { %p23_p4 = scmp.ge.s32.totalorder %s26_s21, 4  }
0x218f   :  { %25 = sbr.rel (!%p23_p4) target bundleno = 2 (0x2), region = 171 }

</bundles_post_ra>
